<compile_context>
chip_gen: v6e
topology: v6e:2x2x1
jax: 0.10.0
libtpu: 0.0.40
codegen_flags: <defaults>
</compile_context>

<pallas_src>
import functools

import jax
import jax.numpy as jnp
from jax.experimental import pallas as pl
from jax.experimental.pallas import tpu as pltpu


# ---------------------------------------------------------------------------
# Fused kernel: per-chunk input projection + LSTM recurrence; on the last
# time chunk: time-mean + classifier FC epilogue.
# ---------------------------------------------------------------------------
def _decoder_rnn_avg_kernel(
        x_ref,        # (Bc, TC, D)  streamed time-chunk of the input
        wih0_ref,     # (D, 4H)      layer-0 input weights (transposed)
        b0_ref,       # (1, 4H)      b_ih0 + b_hh0
        whh0_ref,     # (H, 4H)      layer-0 recurrent weights (transposed)
        w1_ref,       # (2H, 4H)     concat([w_ih1, w_hh1], axis=0), transposed
        b1_ref,       # (1, 4H)      b_ih1 + b_hh1
        wfc_ref,      # (H, C)       classifier weights (transposed)
        bfc_ref,      # (1, C)       classifier bias
        out_ref,      # (Bc, C)      logits (written on the last time chunk)
        gx_ref,       # VMEM scratch (Bc, TC, 4H): hoisted gate inputs
        h0_ref, c0_ref, h1_ref, c1_ref, acc_ref,   # VMEM scratch (Bc, H)
        *, seq_len):
    chunk = pl.program_id(1)
    n_chunks = pl.num_programs(1)
    Bc, TC, D = x_ref.shape
    H = h0_ref.shape[-1]

    @pl.when(chunk == 0)
    def _init():
        z = jnp.zeros_like(h0_ref)
        h0_ref[...] = z
        c0_ref[...] = z
        h1_ref[...] = z
        c1_ref[...] = z
        acc_ref[...] = z

    # -- fused "phase 1": gate-input projection for the whole chunk in one MXU
    # pass (batch folded into the row dimension); bias b0 folded in here.
    x2d = x_ref[...].reshape(Bc * TC, D)
    gx2d = jnp.dot(x2d, wih0_ref[...], preferred_element_type=jnp.float32)
    gx_ref[...] = gx2d.reshape(Bc, TC, 4 * H) + b0_ref[...]

    whh0 = whh0_ref[...]
    w1 = w1_ref[...]
    b1 = jnp.broadcast_to(b1_ref[...], (Bc, 4 * H))   # hoisted: once per chunk

    h0 = h0_ref[...]
    c0 = c0_ref[...]
    h1 = h1_ref[...]
    c1 = c1_ref[...]
    acc = acc_ref[...]

    def lstm_gates(gates, c_prev):
        # PyTorch nn.LSTM gate order [i, f, g, o] along the 4H axis.
        # NOTE: these become full-vreg lane-aligned views once H % 128 == 0
        # (production hidden sizes); at toy H they are masked sub-lane slices.
        i_g = jax.nn.sigmoid(gates[:, 0 * H:1 * H])
        f_g = jax.nn.sigmoid(gates[:, 1 * H:2 * H])
        g_g = jnp.tanh(gates[:, 2 * H:3 * H])
        o_g = jax.nn.sigmoid(gates[:, 3 * H:4 * H])
        c_new = f_g * c_prev + i_g * g_g
        return o_g * jnp.tanh(c_new), c_new

    # -- sequential recurrence over this chunk.  The static Python loop caps
    # the unroll at TC steps; longer sequences add grid steps, not trace size.
    for t in range(TC):
        gates0 = gx_ref[:, t, :] + jnp.dot(
            h0, whh0, preferred_element_type=jnp.float32)
        h0, c0 = lstm_gates(gates0, c0)
        # Fused layer-1 matmul: h0@w_ih1 + h1@w_hh1 == [h0, h1] @ [w_ih1; w_hh1]
        gates1 = jnp.dot(jnp.concatenate([h0, h1], axis=-1), w1,
                         preferred_element_type=jnp.float32) + b1
        h1, c1 = lstm_gates(gates1, c1)
        acc = acc + h1

    h0_ref[...] = h0
    c0_ref[...] = c0
    h1_ref[...] = h1
    c1_ref[...] = c1
    acc_ref[...] = acc

    # -- fused "phase 3": classifier on the time-mean, last chunk only.
    @pl.when(chunk == n_chunks - 1)
    def _epilogue():
        mean = acc * (1.0 / seq_len)
        out_ref[...] = (jnp.dot(mean, wfc_ref[...],
                                preferred_element_type=jnp.float32)
                        + bfc_ref[...]).astype(out_ref.dtype)


# ---------------------------------------------------------------------------
# Wrapper
# ---------------------------------------------------------------------------
@functools.partial(jax.jit, static_argnums=(2, 3))
def _decoder_rnn_avg_impl(x, params, time_chunk, batch_blocks):
    B, T, D = x.shape
    H = params["whh0"].shape[0]
    C = params["wfc"].shape[1]
    Bc = B // batch_blocks
    n_chunks = T // time_chunk
    fourH = 4 * H

    # Fuse the two layer-1 weight matrices once (tiny; cached under jit).
    w1 = jnp.concatenate([params["wih1"], params["whh1"]], axis=0)   # (2H, 4H)

    # Explicit scoped-VMEM limit (review): conservative 2x on multi-buffered
    # pieces, clamped to [32 MiB, 64 MiB] so it is valid on v5e/v6e/v7x.
    f32 = 4
    weight_elems = D * fourH + H * fourH + 2 * H * fourH + 2 * fourH + H * C + C
    est = f32 * (2 * Bc * time_chunk * D            # double-buffered x chunk
                 + 2 * weight_elems                  # resident weights
                 + 2 * Bc * C                        # output block
                 + Bc * time_chunk * fourH           # gx scratch
                 + 5 * Bc * H)                       # h/c/acc scratch
    vmem_limit = int(min(64 * 2 ** 20, max(32 * 2 ** 20, 2 * est)))

    const = lambda b, c: (0, 0)   # weights: resident across the whole grid
    grid_spec = pltpu.PrefetchScalarGridSpec(
        num_scalar_prefetch=0,
        grid=(batch_blocks, n_chunks),
        in_specs=[
            pl.BlockSpec((Bc, time_chunk, D), lambda b, c: (b, c, 0)),  # x
            pl.BlockSpec((D, fourH), const),        # wih0
            pl.BlockSpec((1, fourH), const),        # b0
            pl.BlockSpec((H, fourH), const),        # whh0
            pl.BlockSpec((2 * H, fourH), const),    # w1 = [wih1; whh1]
            pl.BlockSpec((1, fourH), const),        # b1
            pl.BlockSpec((H, C), const),            # wfc
            pl.BlockSpec((1, C), const),            # bfc
        ],
        out_specs=pl.BlockSpec((Bc, C), lambda b, c: (b, 0)),
        scratch_shapes=[
            pltpu.VMEM((Bc, time_chunk, fourH), jnp.float32),   # gx chunk
            pltpu.VMEM((Bc, H), jnp.float32),   # h0
            pltpu.VMEM((Bc, H), jnp.float32),   # c0
            pltpu.VMEM((Bc, H), jnp.float32),   # h1
            pltpu.VMEM((Bc, H), jnp.float32),   # c1
            pltpu.VMEM((Bc, H), jnp.float32),   # acc = sum_t h1
        ],
    )
    kernel = functools.partial(_decoder_rnn_avg_kernel, seq_len=T)
    return pl.pallas_call(
        kernel,
        out_shape=jax.ShapeDtypeStruct((B, C), jnp.float32),
        grid_spec=grid_spec,
        compiler_params=pltpu.CompilerParams(
            dimension_semantics=("parallel", "arbitrary"),
            vmem_limit_bytes=vmem_limit),
    )(x, params["wih0"], params["b0"], params["whh0"], w1,
      params["b1"], params["wfc"], params["bfc"])


def _num_tensorcores():
    try:
        return max(1, int(getattr(jax.devices()[0], "num_cores", 1)))
    except Exception:
        return 1


def decoder_rnn_avg(x, params, *, time_chunk=8, batch_blocks=None):
    """x: (B, T, D) float32 (batch_first, like PyTorch). Returns (B, num_classes)."""
    B, T, _ = x.shape
    if batch_blocks is None:
        # Use both TensorCores where available (v7x).  A serial batch split is
        # a pure loss on 1-core chips and sub-8-row output blocks are not
        # layout-legal, so fall back to 1 in those cases (incl. the toy test).
        batch_blocks = _num_tensorcores()
    if batch_blocks < 1 or B % batch_blocks != 0 or \
            (batch_blocks > 1 and (B // batch_blocks) % 8 != 0):
        batch_blocks = 1
    if time_chunk <= 0 or T % time_chunk != 0 or time_chunk % 8 != 0:
        # TODO(synk): pad/mask ragged sequence lengths instead of falling back
        # to a single whole-sequence chunk.
        time_chunk = T
    return _decoder_rnn_avg_impl(x, params, time_chunk, batch_blocks)


# ---------------------------------------------------------------------------
# Pure-JAX reference + synthetic params (sanity check).
# ---------------------------------------------------------------------------
def _reference_jax(x, params):
    B, T, D = x.shape
    H = params["whh0"].shape[0]

    def cell(x_in, h, c, wih, whh, b):
        g = x_in @ wih + h @ whh + b
        i, f, gg, o = jnp.split(g, 4, axis=-1)
        c_new = jax.nn.sigmoid(f) * c + jax.nn.sigmoid(i) * jnp.tanh(gg)
        h_new = jax.nn.sigmoid(o) * jnp.tanh(c_new)
        return h_new, c_new

    def step(carry, x_t):
        h0, c0, h1, c1 = carry
        h0, c0 = cell(x_t, h0, c0, params["wih0"], params["whh0"], params["b0"])
        h1, c1 = cell(h0, h1, c1, params["wih1"], params["whh1"], params["b1"])
        return (h0, c0, h1, c1), h1

    z = jnp.zeros((B, H), jnp.float32)
    _, hs = jax.lax.scan(step, (z, z, z, z), jnp.transpose(x, (1, 0, 2)))
    rnn_mean = jnp.mean(hs, axis=0)
    return rnn_mean @ params["wfc"] + params["bfc"]


def _init_params(key, D, H, C):
    """Deterministic synthetic params, PyTorch-LSTM-style uniform(-1/sqrt(H), 1/sqrt(H))."""
    k = 1.0 / jnp.sqrt(jnp.float32(H))
    keys = jax.random.split(key, 12)
    u = lambda kk, shape: jax.random.uniform(kk, shape, jnp.float32, -k, k)
    # Layer 0 (input size D), layer 1 (input size H); stored transposed (in, 4H).
    wih0 = u(keys[0], (D, 4 * H))
    whh0 = u(keys[1], (H, 4 * H))
    b0 = u(keys[2], (1, 4 * H)) + u(keys[3], (1, 4 * H))   # b_ih + b_hh
    wih1 = u(keys[4], (H, 4 * H))
    whh1 = u(keys[5], (H, 4 * H))
    b1 = u(keys[6], (1, 4 * H)) + u(keys[7], (1, 4 * H))
    wfc = jax.random.uniform(keys[8], (H, C), jnp.float32, -k, k)
    bfc = jax.random.uniform(keys[9], (1, C), jnp.float32, -k, k)
    return dict(wih0=wih0, whh0=whh0, b0=b0,
                wih1=wih1, whh1=whh1, b1=b1,
                wfc=wfc, bfc=bfc)


if __name__ == "__main__":
    # Small shapes consistent with the module's forward:
    #   x_RNN: (batch, time, CNN_embed_dim) -> logits: (batch, num_classes)
    # T=16 with time_chunk=8 exercises the multi-chunk (carried-state) path.
    B, T, D, H, C = 2, 16, 32, 32, 16

    key = jax.random.PRNGKey(0)
    kx, kp = jax.random.split(key)
    x = jax.random.normal(kx, (B, T, D), jnp.float32)
    params = _init_params(kp, D, H, C)

    out = decoder_rnn_avg(x, params)
    out = jax.block_until_ready(out)

    ref = _reference_jax(x, params)
    assert out.shape == (B, C)
    # f32 end-to-end; tolerance covers MXU accumulation-order differences from
    # the fused layer-1 matmul / hoisted bias.
    assert jnp.allclose(out, ref, rtol=1e-3, atol=1e-3), "mismatch vs JAX reference"

    print("KERNEL_OK")
</pallas_src>

<mosaic_0001>
module attributes {stable_mosaic.version = 11 : i64} {
  func.func @_decoder_rnn_avg_kernel(%arg0: i32, %arg1: i32, %arg2: memref<2x8x32xf32, #tpu.memory_space<vmem>>, %arg3: memref<32x128xf32, #tpu.memory_space<vmem>>, %arg4: memref<1x128xf32, #tpu.memory_space<vmem>>, %arg5: memref<32x128xf32, #tpu.memory_space<vmem>>, %arg6: memref<64x128xf32, #tpu.memory_space<vmem>>, %arg7: memref<1x128xf32, #tpu.memory_space<vmem>>, %arg8: memref<32x16xf32, #tpu.memory_space<vmem>>, %arg9: memref<1x16xf32, #tpu.memory_space<vmem>>, %arg10: memref<2x16xf32, #tpu.memory_space<vmem>>, %arg11: memref<2x8x128xf32, #tpu.memory_space<vmem>>, %arg12: memref<2x32xf32, #tpu.memory_space<vmem>>, %arg13: memref<2x32xf32, #tpu.memory_space<vmem>>, %arg14: memref<2x32xf32, #tpu.memory_space<vmem>>, %arg15: memref<2x32xf32, #tpu.memory_space<vmem>>, %arg16: memref<2x32xf32, #tpu.memory_space<vmem>>) attributes {dimension_semantics = [#tpu.dimension_semantics<parallel>, #tpu.dimension_semantics<arbitrary>], iteration_bounds = array<i64: 1, 2>, scalar_prefetch = 0 : i64, scratch_operands = 6 : i64, tpu.core_type = #tpu.core_type<tc>, window_params = [{transform_indices = @transform_0, window_bounds = array<i64: 2, 8, 32>}, {pipeline_mode = #tpu.pipeline_mode<synchronous>, transform_indices = @transform_1, window_bounds = array<i64: 32, 128>}, {pipeline_mode = #tpu.pipeline_mode<synchronous>, transform_indices = @transform_2, window_bounds = array<i64: 1, 128>}, {pipeline_mode = #tpu.pipeline_mode<synchronous>, transform_indices = @transform_3, window_bounds = array<i64: 32, 128>}, {pipeline_mode = #tpu.pipeline_mode<synchronous>, transform_indices = @transform_4, window_bounds = array<i64: 64, 128>}, {pipeline_mode = #tpu.pipeline_mode<synchronous>, transform_indices = @transform_5, window_bounds = array<i64: 1, 128>}, {pipeline_mode = #tpu.pipeline_mode<synchronous>, transform_indices = @transform_6, window_bounds = array<i64: 32, 16>}, {pipeline_mode = #tpu.pipeline_mode<synchronous>, transform_indices = @transform_7, window_bounds = array<i64: 1, 16>}, {transform_indices = @transform_8, window_bounds = array<i64: 2, 16>}]} {
    %c0_i32 = arith.constant 0 : i32
    %0 = arith.cmpi eq, %arg1, %c0_i32 : i32
    %1 = arith.extui %0 : i1 to i32
    %c0_i32_0 = arith.constant 0 : i32
    %2 = arith.cmpi ne, %1, %c0_i32_0 : i32
    scf.if %2 {
      %cst_118 = arith.constant 0.000000e+00 : f32
      %495 = vector.broadcast %cst_118 : f32 to vector<2x32xf32>
      %c0_119 = arith.constant 0 : index
      %c0_120 = arith.constant 0 : index
      %496 = vector.load %arg12[%c0_119, %c0_120] : memref<2x32xf32, #tpu.memory_space<vmem>>, vector<2x32xf32>
      tpu.vector_store %arg12[%c0_119, %c0_120], %495 {strides = array<i32>} : memref<2x32xf32, #tpu.memory_space<vmem>>, vector<2x32xf32>,
      %c0_121 = arith.constant 0 : index
      %c0_122 = arith.constant 0 : index
      %497 = vector.load %arg13[%c0_121, %c0_122] : memref<2x32xf32, #tpu.memory_space<vmem>>, vector<2x32xf32>
      tpu.vector_store %arg13[%c0_121, %c0_122], %495 {strides = array<i32>} : memref<2x32xf32, #tpu.memory_space<vmem>>, vector<2x32xf32>,
      %c0_123 = arith.constant 0 : index
      %c0_124 = arith.constant 0 : index
      %498 = vector.load %arg14[%c0_123, %c0_124] : memref<2x32xf32, #tpu.memory_space<vmem>>, vector<2x32xf32>
      tpu.vector_store %arg14[%c0_123, %c0_124], %495 {strides = array<i32>} : memref<2x32xf32, #tpu.memory_space<vmem>>, vector<2x32xf32>,
      %c0_125 = arith.constant 0 : index
      %c0_126 = arith.constant 0 : index
      %499 = vector.load %arg15[%c0_125, %c0_126] : memref<2x32xf32, #tpu.memory_space<vmem>>, vector<2x32xf32>
      tpu.vector_store %arg15[%c0_125, %c0_126], %495 {strides = array<i32>} : memref<2x32xf32, #tpu.memory_space<vmem>>, vector<2x32xf32>,
      %c0_127 = arith.constant 0 : index
      %c0_128 = arith.constant 0 : index
      %500 = vector.load %arg16[%c0_127, %c0_128] : memref<2x32xf32, #tpu.memory_space<vmem>>, vector<2x32xf32>
      tpu.vector_store %arg16[%c0_127, %c0_128], %495 {strides = array<i32>} : memref<2x32xf32, #tpu.memory_space<vmem>>, vector<2x32xf32>,
    } else {
    }
    %c0 = arith.constant 0 : index
    %c0_1 = arith.constant 0 : index
    %c0_2 = arith.constant 0 : index
    %3 = vector.load %arg2[%c0, %c0_1, %c0_2] : memref<2x8x32xf32, #tpu.memory_space<vmem>>, vector<2x8x32xf32>
    %4 = vector.shape_cast %3 : vector<2x8x32xf32> to vector<16x32xf32>
    %c0_3 = arith.constant 0 : index
    %c0_4 = arith.constant 0 : index
    %5 = vector.load %arg3[%c0_3, %c0_4] : memref<32x128xf32, #tpu.memory_space<vmem>>, vector<32x128xf32>
    %cst = arith.constant dense<0.000000e+00> : vector<16x128xf32>
    %6 = tpu.matmul %4, %5, %cst {dimension_numbers = #tpu.dot_dimension_numbers<[1], [0], [0], [1], [0, 0, 1, 1], [], []>} : vector<16x32xf32>, vector<32x128xf32>, vector<16x128xf32> -> vector<16x128xf32>
    %7 = vector.shape_cast %6 : vector<16x128xf32> to vector<2x8x128xf32>
    %c0_5 = arith.constant 0 : index
    %c0_6 = arith.constant 0 : index
    %8 = vector.load %arg4[%c0_5, %c0_6] : memref<1x128xf32, #tpu.memory_space<vmem>>, vector<1x128xf32>
    %9 = vector.shape_cast %8 : vector<1x128xf32> to vector<1x1x128xf32>
    %10 = vector.broadcast %9 : vector<1x1x128xf32> to vector<2x8x128xf32>
    %11 = arith.addf %7, %10 : vector<2x8x128xf32>
    %c0_7 = arith.constant 0 : index
    %c0_8 = arith.constant 0 : index
    %c0_9 = arith.constant 0 : index
    %12 = vector.load %arg11[%c0_7, %c0_8, %c0_9] : memref<2x8x128xf32, #tpu.memory_space<vmem>>, vector<2x8x128xf32>
    tpu.vector_store %arg11[%c0_7, %c0_8, %c0_9], %11 {strides = array<i32>} : memref<2x8x128xf32, #tpu.memory_space<vmem>>, vector<2x8x128xf32>,
    %c0_10 = arith.constant 0 : index
    %c0_11 = arith.constant 0 : index
    %13 = vector.load %arg5[%c0_10, %c0_11] : memref<32x128xf32, #tpu.memory_space<vmem>>, vector<32x128xf32>
    %c0_12 = arith.constant 0 : index
    %c0_13 = arith.constant 0 : index
    %14 = vector.load %arg6[%c0_12, %c0_13] : memref<64x128xf32, #tpu.memory_space<vmem>>, vector<64x128xf32>
    %c0_14 = arith.constant 0 : index
    %c0_15 = arith.constant 0 : index
    %15 = vector.load %arg7[%c0_14, %c0_15] : memref<1x128xf32, #tpu.memory_space<vmem>>, vector<1x128xf32>
    %16 = vector.shape_cast %15 : vector<1x128xf32> to vector<1x128xf32>
    %17 = vector.broadcast %16 : vector<1x128xf32> to vector<2x128xf32>
    %c0_16 = arith.constant 0 : index
    %c0_17 = arith.constant 0 : index
    %18 = vector.load %arg12[%c0_16, %c0_17] : memref<2x32xf32, #tpu.memory_space<vmem>>, vector<2x32xf32>
    %c0_18 = arith.constant 0 : index
    %c0_19 = arith.constant 0 : index
    %19 = vector.load %arg13[%c0_18, %c0_19] : memref<2x32xf32, #tpu.memory_space<vmem>>, vector<2x32xf32>
    %c0_20 = arith.constant 0 : index
    %c0_21 = arith.constant 0 : index
    %20 = vector.load %arg14[%c0_20, %c0_21] : memref<2x32xf32, #tpu.memory_space<vmem>>, vector<2x32xf32>
    %c0_22 = arith.constant 0 : index
    %c0_23 = arith.constant 0 : index
    %21 = vector.load %arg15[%c0_22, %c0_23] : memref<2x32xf32, #tpu.memory_space<vmem>>, vector<2x32xf32>
    %c0_24 = arith.constant 0 : index
    %c0_25 = arith.constant 0 : index
    %22 = vector.load %arg16[%c0_24, %c0_25] : memref<2x32xf32, #tpu.memory_space<vmem>>, vector<2x32xf32>
    %c0_26 = arith.constant 0 : index
    %c0_27 = arith.constant 0 : index
    %c0_28 = arith.constant 0 : index
    %23 = vector.load %arg11[%c0_26, %c0_27, %c0_28] : memref<2x8x128xf32, #tpu.memory_space<vmem>>, vector<2x1x128xf32>
    %24 = vector.shape_cast %23 : vector<2x1x128xf32> to vector<2x128xf32>
    %cst_29 = arith.constant dense<0.000000e+00> : vector<2x128xf32>
    %25 = tpu.matmul %18, %13, %cst_29 {dimension_numbers = #tpu.dot_dimension_numbers<[1], [0], [0], [1], [0, 0, 1, 1], [], []>} : vector<2x32xf32>, vector<32x128xf32>, vector<2x128xf32> -> vector<2x128xf32>
    %26 = arith.addf %24, %25 : vector<2x128xf32>
    %27 = vector.extract_strided_slice %26 {offsets = [0, 0], sizes = [2, 32], strides = [1, 1]} : vector<2x128xf32> to vector<2x32xf32>
    %28 = arith.negf %27 : vector<2x32xf32>
    %29 = math.exp %28 : vector<2x32xf32>
    %cst_30 = arith.constant 1.000000e+00 : f32
    %30 = vector.broadcast %cst_30 : f32 to vector<2x32xf32>
    %31 = arith.addf %30, %29 : vector<2x32xf32>
    %32 = arith.divf %30, %31 : vector<2x32xf32>
    %33 = vector.extract_strided_slice %26 {offsets = [0, 32], sizes = [2, 32], strides = [1, 1]} : vector<2x128xf32> to vector<2x32xf32>
    %34 = arith.negf %33 : vector<2x32xf32>
    %35 = math.exp %34 : vector<2x32xf32>
    %cst_31 = arith.constant 1.000000e+00 : f32
    %36 = vector.broadcast %cst_31 : f32 to vector<2x32xf32>
    %37 = arith.addf %36, %35 : vector<2x32xf32>
    %38 = arith.divf %36, %37 : vector<2x32xf32>
    %39 = vector.extract_strided_slice %26 {offsets = [0, 64], sizes = [2, 32], strides = [1, 1]} : vector<2x128xf32> to vector<2x32xf32>
    %40 = math.tanh %39 : vector<2x32xf32>
    %41 = vector.extract_strided_slice %26 {offsets = [0, 96], sizes = [2, 32], strides = [1, 1]} : vector<2x128xf32> to vector<2x32xf32>
    %42 = arith.negf %41 : vector<2x32xf32>
    %43 = math.exp %42 : vector<2x32xf32>
    %cst_32 = arith.constant 1.000000e+00 : f32
    %44 = vector.broadcast %cst_32 : f32 to vector<2x32xf32>
    %45 = arith.addf %44, %43 : vector<2x32xf32>
    %46 = arith.divf %44, %45 : vector<2x32xf32>
    %47 = arith.mulf %38, %19 : vector<2x32xf32>
    %48 = arith.mulf %32, %40 : vector<2x32xf32>
    %49 = arith.addf %47, %48 : vector<2x32xf32>
    %50 = math.tanh %49 : vector<2x32xf32>
    %51 = arith.mulf %46, %50 : vector<2x32xf32>
    %52 = tpu.concatenate %51, %20 in 1 : vector<2x32xf32>, vector<2x32xf32> -> vector<2x64xf32>
    %cst_33 = arith.constant dense<0.000000e+00> : vector<2x128xf32>
    %53 = tpu.matmul %52, %14, %cst_33 {dimension_numbers = #tpu.dot_dimension_numbers<[1], [0], [0], [1], [0, 0, 1, 1], [], []>} : vector<2x64xf32>, vector<64x128xf32>, vector<2x128xf32> -> vector<2x128xf32>
    %54 = arith.addf %53, %17 : vector<2x128xf32>
    %55 = vector.extract_strided_slice %54 {offsets = [0, 0], sizes = [2, 32], strides = [1, 1]} : vector<2x128xf32> to vector<2x32xf32>
    %56 = arith.negf %55 : vector<2x32xf32>
    %57 = math.exp %56 : vector<2x32xf32>
    %cst_34 = arith.constant 1.000000e+00 : f32
    %58 = vector.broadcast %cst_34 : f32 to vector<2x32xf32>
    %59 = arith.addf %58, %57 : vector<2x32xf32>
    %60 = arith.divf %58, %59 : vector<2x32xf32>
    %61 = vector.extract_strided_slice %54 {offsets = [0, 32], sizes = [2, 32], strides = [1, 1]} : vector<2x128xf32> to vector<2x32xf32>
    %62 = arith.negf %61 : vector<2x32xf32>
    %63 = math.exp %62 : vector<2x32xf32>
    %cst_35 = arith.constant 1.000000e+00 : f32
    %64 = vector.broadcast %cst_35 : f32 to vector<2x32xf32>
    %65 = arith.addf %64, %63 : vector<2x32xf32>
    %66 = arith.divf %64, %65 : vector<2x32xf32>
    %67 = vector.extract_strided_slice %54 {offsets = [0, 64], sizes = [2, 32], strides = [1, 1]} : vector<2x128xf32> to vector<2x32xf32>
    %68 = math.tanh %67 : vector<2x32xf32>
    %69 = vector.extract_strided_slice %54 {offsets = [0, 96], sizes = [2, 32], strides = [1, 1]} : vector<2x128xf32> to vector<2x32xf32>
    %70 = arith.negf %69 : vector<2x32xf32>
    %71 = math.exp %70 : vector<2x32xf32>
    %cst_36 = arith.constant 1.000000e+00 : f32
    %72 = vector.broadcast %cst_36 : f32 to vector<2x32xf32>
    %73 = arith.addf %72, %71 : vector<2x32xf32>
    %74 = arith.divf %72, %73 : vector<2x32xf32>
    %75 = arith.mulf %66, %21 : vector<2x32xf32>
    %76 = arith.mulf %60, %68 : vector<2x32xf32>
    %77 = arith.addf %75, %76 : vector<2x32xf32>
    %78 = math.tanh %77 : vector<2x32xf32>
    %79 = arith.mulf %74, %78 : vector<2x32xf32>
    %80 = arith.addf %22, %79 : vector<2x32xf32>
    %c0_37 = arith.constant 0 : index
    %c1 = arith.constant 1 : index
    %c0_38 = arith.constant 0 : index
    %81 = vector.load %arg11[%c0_37, %c1, %c0_38] : memref<2x8x128xf32, #tpu.memory_space<vmem>>, vector<2x1x128xf32>
    %82 = vector.shape_cast %81 : vector<2x1x128xf32> to vector<2x128xf32>
    %cst_39 = arith.constant dense<0.000000e+00> : vector<2x128xf32>
    %83 = tpu.matmul %51, %13, %cst_39 {dimension_numbers = #tpu.dot_dimension_numbers<[1], [0], [0], [1], [0, 0, 1, 1], [], []>} : vector<2x32xf32>, vector<32x128xf32>, vector<2x128xf32> -> vector<2x128xf32>
    %84 = arith.addf %82, %83 : vector<2x128xf32>
    %85 = vector.extract_strided_slice %84 {offsets = [0, 0], sizes = [2, 32], strides = [1, 1]} : vector<2x128xf32> to vector<2x32xf32>
    %86 = arith.negf %85 : vector<2x32xf32>
    %87 = math.exp %86 : vector<2x32xf32>
    %cst_40 = arith.constant 1.000000e+00 : f32
    %88 = vector.broadcast %cst_40 : f32 to vector<2x32xf32>
    %89 = arith.addf %88, %87 : vector<2x32xf32>
    %90 = arith.divf %88, %89 : vector<2x32xf32>
    %91 = vector.extract_strided_slice %84 {offsets = [0, 32], sizes = [2, 32], strides = [1, 1]} : vector<2x128xf32> to vector<2x32xf32>
    %92 = arith.negf %91 : vector<2x32xf32>
    %93 = math.exp %92 : vector<2x32xf32>
    %cst_41 = arith.constant 1.000000e+00 : f32
    %94 = vector.broadcast %cst_41 : f32 to vector<2x32xf32>
    %95 = arith.addf %94, %93 : vector<2x32xf32>
    %96 = arith.divf %94, %95 : vector<2x32xf32>
    %97 = vector.extract_strided_slice %84 {offsets = [0, 64], sizes = [2, 32], strides = [1, 1]} : vector<2x128xf32> to vector<2x32xf32>
    %98 = math.tanh %97 : vector<2x32xf32>
    %99 = vector.extract_strided_slice %84 {offsets = [0, 96], sizes = [2, 32], strides = [1, 1]} : vector<2x128xf32> to vector<2x32xf32>
    %100 = arith.negf %99 : vector<2x32xf32>
    %101 = math.exp %100 : vector<2x32xf32>
    %cst_42 = arith.constant 1.000000e+00 : f32
    %102 = vector.broadcast %cst_42 : f32 to vector<2x32xf32>
    %103 = arith.addf %102, %101 : vector<2x32xf32>
    %104 = arith.divf %102, %103 : vector<2x32xf32>
    %105 = arith.mulf %96, %49 : vector<2x32xf32>
    %106 = arith.mulf %90, %98 : vector<2x32xf32>
    %107 = arith.addf %105, %106 : vector<2x32xf32>
    %108 = math.tanh %107 : vector<2x32xf32>
    %109 = arith.mulf %104, %108 : vector<2x32xf32>
    %110 = tpu.concatenate %109, %79 in 1 : vector<2x32xf32>, vector<2x32xf32> -> vector<2x64xf32>
    %cst_43 = arith.constant dense<0.000000e+00> : vector<2x128xf32>
    %111 = tpu.matmul %110, %14, %cst_43 {dimension_numbers = #tpu.dot_dimension_numbers<[1], [0], [0], [1], [0, 0, 1, 1], [], []>} : vector<2x64xf32>, vector<64x128xf32>, vector<2x128xf32> -> vector<2x128xf32>
    %112 = arith.addf %111, %17 : vector<2x128xf32>
    %113 = vector.extract_strided_slice %112 {offsets = [0, 0], sizes = [2, 32], strides = [1, 1]} : vector<2x128xf32> to vector<2x32xf32>
    %114 = arith.negf %113 : vector<2x32xf32>
    %115 = math.exp %114 : vector<2x32xf32>
    %cst_44 = arith.constant 1.000000e+00 : f32
    %116 = vector.broadcast %cst_44 : f32 to vector<2x32xf32>
    %117 = arith.addf %116, %115 : vector<2x32xf32>
    %118 = arith.divf %116, %117 : vector<2x32xf32>
    %119 = vector.extract_strided_slice %112 {offsets = [0, 32], sizes = [2, 32], strides = [1, 1]} : vector<2x128xf32> to vector<2x32xf32>
    %120 = arith.negf %119 : vector<2x32xf32>
    %121 = math.exp %120 : vector<2x32xf32>
    %cst_45 = arith.constant 1.000000e+00 : f32
    %122 = vector.broadcast %cst_45 : f32 to vector<2x32xf32>
    %123 = arith.addf %122, %121 : vector<2x32xf32>
    %124 = arith.divf %122, %123 : vector<2x32xf32>
    %125 = vector.extract_strided_slice %112 {offsets = [0, 64], sizes = [2, 32], strides = [1, 1]} : vector<2x128xf32> to vector<2x32xf32>
    %126 = math.tanh %125 : vector<2x32xf32>
    %127 = vector.extract_strided_slice %112 {offsets = [0, 96], sizes = [2, 32], strides = [1, 1]} : vector<2x128xf32> to vector<2x32xf32>
    %128 = arith.negf %127 : vector<2x32xf32>
    %129 = math.exp %128 : vector<2x32xf32>
    %cst_46 = arith.constant 1.000000e+00 : f32
    %130 = vector.broadcast %cst_46 : f32 to vector<2x32xf32>
    %131 = arith.addf %130, %129 : vector<2x32xf32>
    %132 = arith.divf %130, %131 : vector<2x32xf32>
    %133 = arith.mulf %124, %77 : vector<2x32xf32>
    %134 = arith.mulf %118, %126 : vector<2x32xf32>
    %135 = arith.addf %133, %134 : vector<2x32xf32>
    %136 = math.tanh %135 : vector<2x32xf32>
    %137 = arith.mulf %132, %136 : vector<2x32xf32>
    %138 = arith.addf %80, %137 : vector<2x32xf32>
    %c0_47 = arith.constant 0 : index
    %c2 = arith.constant 2 : index
    %c0_48 = arith.constant 0 : index
    %139 = vector.load %arg11[%c0_47, %c2, %c0_48] : memref<2x8x128xf32, #tpu.memory_space<vmem>>, vector<2x1x128xf32>
    %140 = vector.shape_cast %139 : vector<2x1x128xf32> to vector<2x128xf32>
    %cst_49 = arith.constant dense<0.000000e+00> : vector<2x128xf32>
    %141 = tpu.matmul %109, %13, %cst_49 {dimension_numbers = #tpu.dot_dimension_numbers<[1], [0], [0], [1], [0, 0, 1, 1], [], []>} : vector<2x32xf32>, vector<32x128xf32>, vector<2x128xf32> -> vector<2x128xf32>
    %142 = arith.addf %140, %141 : vector<2x128xf32>
    %143 = vector.extract_strided_slice %142 {offsets = [0, 0], sizes = [2, 32], strides = [1, 1]} : vector<2x128xf32> to vector<2x32xf32>
    %144 = arith.negf %143 : vector<2x32xf32>
    %145 = math.exp %144 : vector<2x32xf32>
    %cst_50 = arith.constant 1.000000e+00 : f32
    %146 = vector.broadcast %cst_50 : f32 to vector<2x32xf32>
    %147 = arith.addf %146, %145 : vector<2x32xf32>
    %148 = arith.divf %146, %147 : vector<2x32xf32>
    %149 = vector.extract_strided_slice %142 {offsets = [0, 32], sizes = [2, 32], strides = [1, 1]} : vector<2x128xf32> to vector<2x32xf32>
    %150 = arith.negf %149 : vector<2x32xf32>
    %151 = math.exp %150 : vector<2x32xf32>
    %cst_51 = arith.constant 1.000000e+00 : f32
    %152 = vector.broadcast %cst_51 : f32 to vector<2x32xf32>
    %153 = arith.addf %152, %151 : vector<2x32xf32>
    %154 = arith.divf %152, %153 : vector<2x32xf32>
    %155 = vector.extract_strided_slice %142 {offsets = [0, 64], sizes = [2, 32], strides = [1, 1]} : vector<2x128xf32> to vector<2x32xf32>
    %156 = math.tanh %155 : vector<2x32xf32>
    %157 = vector.extract_strided_slice %142 {offsets = [0, 96], sizes = [2, 32], strides = [1, 1]} : vector<2x128xf32> to vector<2x32xf32>
    %158 = arith.negf %157 : vector<2x32xf32>
    %159 = math.exp %158 : vector<2x32xf32>
    %cst_52 = arith.constant 1.000000e+00 : f32
    %160 = vector.broadcast %cst_52 : f32 to vector<2x32xf32>
    %161 = arith.addf %160, %159 : vector<2x32xf32>
    %162 = arith.divf %160, %161 : vector<2x32xf32>
    %163 = arith.mulf %154, %107 : vector<2x32xf32>
    %164 = arith.mulf %148, %156 : vector<2x32xf32>
    %165 = arith.addf %163, %164 : vector<2x32xf32>
    %166 = math.tanh %165 : vector<2x32xf32>
    %167 = arith.mulf %162, %166 : vector<2x32xf32>
    %168 = tpu.concatenate %167, %137 in 1 : vector<2x32xf32>, vector<2x32xf32> -> vector<2x64xf32>
    %cst_53 = arith.constant dense<0.000000e+00> : vector<2x128xf32>
    %169 = tpu.matmul %168, %14, %cst_53 {dimension_numbers = #tpu.dot_dimension_numbers<[1], [0], [0], [1], [0, 0, 1, 1], [], []>} : vector<2x64xf32>, vector<64x128xf32>, vector<2x128xf32> -> vector<2x128xf32>
    %170 = arith.addf %169, %17 : vector<2x128xf32>
    %171 = vector.extract_strided_slice %170 {offsets = [0, 0], sizes = [2, 32], strides = [1, 1]} : vector<2x128xf32> to vector<2x32xf32>
    %172 = arith.negf %171 : vector<2x32xf32>
    %173 = math.exp %172 : vector<2x32xf32>
    %cst_54 = arith.constant 1.000000e+00 : f32
    %174 = vector.broadcast %cst_54 : f32 to vector<2x32xf32>
    %175 = arith.addf %174, %173 : vector<2x32xf32>
    %176 = arith.divf %174, %175 : vector<2x32xf32>
    %177 = vector.extract_strided_slice %170 {offsets = [0, 32], sizes = [2, 32], strides = [1, 1]} : vector<2x128xf32> to vector<2x32xf32>
    %178 = arith.negf %177 : vector<2x32xf32>
    %179 = math.exp %178 : vector<2x32xf32>
    %cst_55 = arith.constant 1.000000e+00 : f32
    %180 = vector.broadcast %cst_55 : f32 to vector<2x32xf32>
    %181 = arith.addf %180, %179 : vector<2x32xf32>
    %182 = arith.divf %180, %181 : vector<2x32xf32>
    %183 = vector.extract_strided_slice %170 {offsets = [0, 64], sizes = [2, 32], strides = [1, 1]} : vector<2x128xf32> to vector<2x32xf32>
    %184 = math.tanh %183 : vector<2x32xf32>
    %185 = vector.extract_strided_slice %170 {offsets = [0, 96], sizes = [2, 32], strides = [1, 1]} : vector<2x128xf32> to vector<2x32xf32>
    %186 = arith.negf %185 : vector<2x32xf32>
    %187 = math.exp %186 : vector<2x32xf32>
    %cst_56 = arith.constant 1.000000e+00 : f32
    %188 = vector.broadcast %cst_56 : f32 to vector<2x32xf32>
    %189 = arith.addf %188, %187 : vector<2x32xf32>
    %190 = arith.divf %188, %189 : vector<2x32xf32>
    %191 = arith.mulf %182, %135 : vector<2x32xf32>
    %192 = arith.mulf %176, %184 : vector<2x32xf32>
    %193 = arith.addf %191, %192 : vector<2x32xf32>
    %194 = math.tanh %193 : vector<2x32xf32>
    %195 = arith.mulf %190, %194 : vector<2x32xf32>
    %196 = arith.addf %138, %195 : vector<2x32xf32>
    %c0_57 = arith.constant 0 : index
    %c3 = arith.constant 3 : index
    %c0_58 = arith.constant 0 : index
    %197 = vector.load %arg11[%c0_57, %c3, %c0_58] : memref<2x8x128xf32, #tpu.memory_space<vmem>>, vector<2x1x128xf32>
    %198 = vector.shape_cast %197 : vector<2x1x128xf32> to vector<2x128xf32>
    %cst_59 = arith.constant dense<0.000000e+00> : vector<2x128xf32>
    %199 = tpu.matmul %167, %13, %cst_59 {dimension_numbers = #tpu.dot_dimension_numbers<[1], [0], [0], [1], [0, 0, 1, 1], [], []>} : vector<2x32xf32>, vector<32x128xf32>, vector<2x128xf32> -> vector<2x128xf32>
    %200 = arith.addf %198, %199 : vector<2x128xf32>
    %201 = vector.extract_strided_slice %200 {offsets = [0, 0], sizes = [2, 32], strides = [1, 1]} : vector<2x128xf32> to vector<2x32xf32>
    %202 = arith.negf %201 : vector<2x32xf32>
    %203 = math.exp %202 : vector<2x32xf32>
    %cst_60 = arith.constant 1.000000e+00 : f32
    %204 = vector.broadcast %cst_60 : f32 to vector<2x32xf32>
    %205 = arith.addf %204, %203 : vector<2x32xf32>
    %206 = arith.divf %204, %205 : vector<2x32xf32>
    %207 = vector.extract_strided_slice %200 {offsets = [0, 32], sizes = [2, 32], strides = [1, 1]} : vector<2x128xf32> to vector<2x32xf32>
    %208 = arith.negf %207 : vector<2x32xf32>
    %209 = math.exp %208 : vector<2x32xf32>
    %cst_61 = arith.constant 1.000000e+00 : f32
    %210 = vector.broadcast %cst_61 : f32 to vector<2x32xf32>
    %211 = arith.addf %210, %209 : vector<2x32xf32>
    %212 = arith.divf %210, %211 : vector<2x32xf32>
    %213 = vector.extract_strided_slice %200 {offsets = [0, 64], sizes = [2, 32], strides = [1, 1]} : vector<2x128xf32> to vector<2x32xf32>
    %214 = math.tanh %213 : vector<2x32xf32>
    %215 = vector.extract_strided_slice %200 {offsets = [0, 96], sizes = [2, 32], strides = [1, 1]} : vector<2x128xf32> to vector<2x32xf32>
    %216 = arith.negf %215 : vector<2x32xf32>
    %217 = math.exp %216 : vector<2x32xf32>
    %cst_62 = arith.constant 1.000000e+00 : f32
    %218 = vector.broadcast %cst_62 : f32 to vector<2x32xf32>
    %219 = arith.addf %218, %217 : vector<2x32xf32>
    %220 = arith.divf %218, %219 : vector<2x32xf32>
    %221 = arith.mulf %212, %165 : vector<2x32xf32>
    %222 = arith.mulf %206, %214 : vector<2x32xf32>
    %223 = arith.addf %221, %222 : vector<2x32xf32>
    %224 = math.tanh %223 : vector<2x32xf32>
    %225 = arith.mulf %220, %224 : vector<2x32xf32>
    %226 = tpu.concatenate %225, %195 in 1 : vector<2x32xf32>, vector<2x32xf32> -> vector<2x64xf32>
    %cst_63 = arith.constant dense<0.000000e+00> : vector<2x128xf32>
    %227 = tpu.matmul %226, %14, %cst_63 {dimension_numbers = #tpu.dot_dimension_numbers<[1], [0], [0], [1], [0, 0, 1, 1], [], []>} : vector<2x64xf32>, vector<64x128xf32>, vector<2x128xf32> -> vector<2x128xf32>
    %228 = arith.addf %227, %17 : vector<2x128xf32>
    %229 = vector.extract_strided_slice %228 {offsets = [0, 0], sizes = [2, 32], strides = [1, 1]} : vector<2x128xf32> to vector<2x32xf32>
    %230 = arith.negf %229 : vector<2x32xf32>
    %231 = math.exp %230 : vector<2x32xf32>
    %cst_64 = arith.constant 1.000000e+00 : f32
    %232 = vector.broadcast %cst_64 : f32 to vector<2x32xf32>
    %233 = arith.addf %232, %231 : vector<2x32xf32>
    %234 = arith.divf %232, %233 : vector<2x32xf32>
    %235 = vector.extract_strided_slice %228 {offsets = [0, 32], sizes = [2, 32], strides = [1, 1]} : vector<2x128xf32> to vector<2x32xf32>
    %236 = arith.negf %235 : vector<2x32xf32>
    %237 = math.exp %236 : vector<2x32xf32>
    %cst_65 = arith.constant 1.000000e+00 : f32
    %238 = vector.broadcast %cst_65 : f32 to vector<2x32xf32>
    %239 = arith.addf %238, %237 : vector<2x32xf32>
    %240 = arith.divf %238, %239 : vector<2x32xf32>
    %241 = vector.extract_strided_slice %228 {offsets = [0, 64], sizes = [2, 32], strides = [1, 1]} : vector<2x128xf32> to vector<2x32xf32>
    %242 = math.tanh %241 : vector<2x32xf32>
    %243 = vector.extract_strided_slice %228 {offsets = [0, 96], sizes = [2, 32], strides = [1, 1]} : vector<2x128xf32> to vector<2x32xf32>
    %244 = arith.negf %243 : vector<2x32xf32>
    %245 = math.exp %244 : vector<2x32xf32>
    %cst_66 = arith.constant 1.000000e+00 : f32
    %246 = vector.broadcast %cst_66 : f32 to vector<2x32xf32>
    %247 = arith.addf %246, %245 : vector<2x32xf32>
    %248 = arith.divf %246, %247 : vector<2x32xf32>
    %249 = arith.mulf %240, %193 : vector<2x32xf32>
    %250 = arith.mulf %234, %242 : vector<2x32xf32>
    %251 = arith.addf %249, %250 : vector<2x32xf32>
    %252 = math.tanh %251 : vector<2x32xf32>
    %253 = arith.mulf %248, %252 : vector<2x32xf32>
    %254 = arith.addf %196, %253 : vector<2x32xf32>
    %c0_67 = arith.constant 0 : index
    %c4 = arith.constant 4 : index
    %c0_68 = arith.constant 0 : index
    %255 = vector.load %arg11[%c0_67, %c4, %c0_68] : memref<2x8x128xf32, #tpu.memory_space<vmem>>, vector<2x1x128xf32>
    %256 = vector.shape_cast %255 : vector<2x1x128xf32> to vector<2x128xf32>
    %cst_69 = arith.constant dense<0.000000e+00> : vector<2x128xf32>
    %257 = tpu.matmul %225, %13, %cst_69 {dimension_numbers = #tpu.dot_dimension_numbers<[1], [0], [0], [1], [0, 0, 1, 1], [], []>} : vector<2x32xf32>, vector<32x128xf32>, vector<2x128xf32> -> vector<2x128xf32>
    %258 = arith.addf %256, %257 : vector<2x128xf32>
    %259 = vector.extract_strided_slice %258 {offsets = [0, 0], sizes = [2, 32], strides = [1, 1]} : vector<2x128xf32> to vector<2x32xf32>
    %260 = arith.negf %259 : vector<2x32xf32>
    %261 = math.exp %260 : vector<2x32xf32>
    %cst_70 = arith.constant 1.000000e+00 : f32
    %262 = vector.broadcast %cst_70 : f32 to vector<2x32xf32>
    %263 = arith.addf %262, %261 : vector<2x32xf32>
    %264 = arith.divf %262, %263 : vector<2x32xf32>
    %265 = vector.extract_strided_slice %258 {offsets = [0, 32], sizes = [2, 32], strides = [1, 1]} : vector<2x128xf32> to vector<2x32xf32>
    %266 = arith.negf %265 : vector<2x32xf32>
    %267 = math.exp %266 : vector<2x32xf32>
    %cst_71 = arith.constant 1.000000e+00 : f32
    %268 = vector.broadcast %cst_71 : f32 to vector<2x32xf32>
    %269 = arith.addf %268, %267 : vector<2x32xf32>
    %270 = arith.divf %268, %269 : vector<2x32xf32>
    %271 = vector.extract_strided_slice %258 {offsets = [0, 64], sizes = [2, 32], strides = [1, 1]} : vector<2x128xf32> to vector<2x32xf32>
    %272 = math.tanh %271 : vector<2x32xf32>
    %273 = vector.extract_strided_slice %258 {offsets = [0, 96], sizes = [2, 32], strides = [1, 1]} : vector<2x128xf32> to vector<2x32xf32>
    %274 = arith.negf %273 : vector<2x32xf32>
    %275 = math.exp %274 : vector<2x32xf32>
    %cst_72 = arith.constant 1.000000e+00 : f32
    %276 = vector.broadcast %cst_72 : f32 to vector<2x32xf32>
    %277 = arith.addf %276, %275 : vector<2x32xf32>
    %278 = arith.divf %276, %277 : vector<2x32xf32>
    %279 = arith.mulf %270, %223 : vector<2x32xf32>
    %280 = arith.mulf %264, %272 : vector<2x32xf32>
    %281 = arith.addf %279, %280 : vector<2x32xf32>
    %282 = math.tanh %281 : vector<2x32xf32>
    %283 = arith.mulf %278, %282 : vector<2x32xf32>
    %284 = tpu.concatenate %283, %253 in 1 : vector<2x32xf32>, vector<2x32xf32> -> vector<2x64xf32>
    %cst_73 = arith.constant dense<0.000000e+00> : vector<2x128xf32>
    %285 = tpu.matmul %284, %14, %cst_73 {dimension_numbers = #tpu.dot_dimension_numbers<[1], [0], [0], [1], [0, 0, 1, 1], [], []>} : vector<2x64xf32>, vector<64x128xf32>, vector<2x128xf32> -> vector<2x128xf32>
    %286 = arith.addf %285, %17 : vector<2x128xf32>
    %287 = vector.extract_strided_slice %286 {offsets = [0, 0], sizes = [2, 32], strides = [1, 1]} : vector<2x128xf32> to vector<2x32xf32>
    %288 = arith.negf %287 : vector<2x32xf32>
    %289 = math.exp %288 : vector<2x32xf32>
    %cst_74 = arith.constant 1.000000e+00 : f32
    %290 = vector.broadcast %cst_74 : f32 to vector<2x32xf32>
    %291 = arith.addf %290, %289 : vector<2x32xf32>
    %292 = arith.divf %290, %291 : vector<2x32xf32>
    %293 = vector.extract_strided_slice %286 {offsets = [0, 32], sizes = [2, 32], strides = [1, 1]} : vector<2x128xf32> to vector<2x32xf32>
    %294 = arith.negf %293 : vector<2x32xf32>
    %295 = math.exp %294 : vector<2x32xf32>
    %cst_75 = arith.constant 1.000000e+00 : f32
    %296 = vector.broadcast %cst_75 : f32 to vector<2x32xf32>
    %297 = arith.addf %296, %295 : vector<2x32xf32>
    %298 = arith.divf %296, %297 : vector<2x32xf32>
    %299 = vector.extract_strided_slice %286 {offsets = [0, 64], sizes = [2, 32], strides = [1, 1]} : vector<2x128xf32> to vector<2x32xf32>
    %300 = math.tanh %299 : vector<2x32xf32>
    %301 = vector.extract_strided_slice %286 {offsets = [0, 96], sizes = [2, 32], strides = [1, 1]} : vector<2x128xf32> to vector<2x32xf32>
    %302 = arith.negf %301 : vector<2x32xf32>
    %303 = math.exp %302 : vector<2x32xf32>
    %cst_76 = arith.constant 1.000000e+00 : f32
    %304 = vector.broadcast %cst_76 : f32 to vector<2x32xf32>
    %305 = arith.addf %304, %303 : vector<2x32xf32>
    %306 = arith.divf %304, %305 : vector<2x32xf32>
    %307 = arith.mulf %298, %251 : vector<2x32xf32>
    %308 = arith.mulf %292, %300 : vector<2x32xf32>
    %309 = arith.addf %307, %308 : vector<2x32xf32>
    %310 = math.tanh %309 : vector<2x32xf32>
    %311 = arith.mulf %306, %310 : vector<2x32xf32>
    %312 = arith.addf %254, %311 : vector<2x32xf32>
    %c0_77 = arith.constant 0 : index
    %c5 = arith.constant 5 : index
    %c0_78 = arith.constant 0 : index
    %313 = vector.load %arg11[%c0_77, %c5, %c0_78] : memref<2x8x128xf32, #tpu.memory_space<vmem>>, vector<2x1x128xf32>
    %314 = vector.shape_cast %313 : vector<2x1x128xf32> to vector<2x128xf32>
    %cst_79 = arith.constant dense<0.000000e+00> : vector<2x128xf32>
    %315 = tpu.matmul %283, %13, %cst_79 {dimension_numbers = #tpu.dot_dimension_numbers<[1], [0], [0], [1], [0, 0, 1, 1], [], []>} : vector<2x32xf32>, vector<32x128xf32>, vector<2x128xf32> -> vector<2x128xf32>
    %316 = arith.addf %314, %315 : vector<2x128xf32>
    %317 = vector.extract_strided_slice %316 {offsets = [0, 0], sizes = [2, 32], strides = [1, 1]} : vector<2x128xf32> to vector<2x32xf32>
    %318 = arith.negf %317 : vector<2x32xf32>
    %319 = math.exp %318 : vector<2x32xf32>
    %cst_80 = arith.constant 1.000000e+00 : f32
    %320 = vector.broadcast %cst_80 : f32 to vector<2x32xf32>
    %321 = arith.addf %320, %319 : vector<2x32xf32>
    %322 = arith.divf %320, %321 : vector<2x32xf32>
    %323 = vector.extract_strided_slice %316 {offsets = [0, 32], sizes = [2, 32], strides = [1, 1]} : vector<2x128xf32> to vector<2x32xf32>
    %324 = arith.negf %323 : vector<2x32xf32>
    %325 = math.exp %324 : vector<2x32xf32>
    %cst_81 = arith.constant 1.000000e+00 : f32
    %326 = vector.broadcast %cst_81 : f32 to vector<2x32xf32>
    %327 = arith.addf %326, %325 : vector<2x32xf32>
    %328 = arith.divf %326, %327 : vector<2x32xf32>
    %329 = vector.extract_strided_slice %316 {offsets = [0, 64], sizes = [2, 32], strides = [1, 1]} : vector<2x128xf32> to vector<2x32xf32>
    %330 = math.tanh %329 : vector<2x32xf32>
    %331 = vector.extract_strided_slice %316 {offsets = [0, 96], sizes = [2, 32], strides = [1, 1]} : vector<2x128xf32> to vector<2x32xf32>
    %332 = arith.negf %331 : vector<2x32xf32>
    %333 = math.exp %332 : vector<2x32xf32>
    %cst_82 = arith.constant 1.000000e+00 : f32
    %334 = vector.broadcast %cst_82 : f32 to vector<2x32xf32>
    %335 = arith.addf %334, %333 : vector<2x32xf32>
    %336 = arith.divf %334, %335 : vector<2x32xf32>
    %337 = arith.mulf %328, %281 : vector<2x32xf32>
    %338 = arith.mulf %322, %330 : vector<2x32xf32>
    %339 = arith.addf %337, %338 : vector<2x32xf32>
    %340 = math.tanh %339 : vector<2x32xf32>
    %341 = arith.mulf %336, %340 : vector<2x32xf32>
    %342 = tpu.concatenate %341, %311 in 1 : vector<2x32xf32>, vector<2x32xf32> -> vector<2x64xf32>
    %cst_83 = arith.constant dense<0.000000e+00> : vector<2x128xf32>
    %343 = tpu.matmul %342, %14, %cst_83 {dimension_numbers = #tpu.dot_dimension_numbers<[1], [0], [0], [1], [0, 0, 1, 1], [], []>} : vector<2x64xf32>, vector<64x128xf32>, vector<2x128xf32> -> vector<2x128xf32>
    %344 = arith.addf %343, %17 : vector<2x128xf32>
    %345 = vector.extract_strided_slice %344 {offsets = [0, 0], sizes = [2, 32], strides = [1, 1]} : vector<2x128xf32> to vector<2x32xf32>
    %346 = arith.negf %345 : vector<2x32xf32>
    %347 = math.exp %346 : vector<2x32xf32>
    %cst_84 = arith.constant 1.000000e+00 : f32
    %348 = vector.broadcast %cst_84 : f32 to vector<2x32xf32>
    %349 = arith.addf %348, %347 : vector<2x32xf32>
    %350 = arith.divf %348, %349 : vector<2x32xf32>
    %351 = vector.extract_strided_slice %344 {offsets = [0, 32], sizes = [2, 32], strides = [1, 1]} : vector<2x128xf32> to vector<2x32xf32>
    %352 = arith.negf %351 : vector<2x32xf32>
    %353 = math.exp %352 : vector<2x32xf32>
    %cst_85 = arith.constant 1.000000e+00 : f32
    %354 = vector.broadcast %cst_85 : f32 to vector<2x32xf32>
    %355 = arith.addf %354, %353 : vector<2x32xf32>
    %356 = arith.divf %354, %355 : vector<2x32xf32>
    %357 = vector.extract_strided_slice %344 {offsets = [0, 64], sizes = [2, 32], strides = [1, 1]} : vector<2x128xf32> to vector<2x32xf32>
    %358 = math.tanh %357 : vector<2x32xf32>
    %359 = vector.extract_strided_slice %344 {offsets = [0, 96], sizes = [2, 32], strides = [1, 1]} : vector<2x128xf32> to vector<2x32xf32>
    %360 = arith.negf %359 : vector<2x32xf32>
    %361 = math.exp %360 : vector<2x32xf32>
    %cst_86 = arith.constant 1.000000e+00 : f32
    %362 = vector.broadcast %cst_86 : f32 to vector<2x32xf32>
    %363 = arith.addf %362, %361 : vector<2x32xf32>
    %364 = arith.divf %362, %363 : vector<2x32xf32>
    %365 = arith.mulf %356, %309 : vector<2x32xf32>
    %366 = arith.mulf %350, %358 : vector<2x32xf32>
    %367 = arith.addf %365, %366 : vector<2x32xf32>
    %368 = math.tanh %367 : vector<2x32xf32>
    %369 = arith.mulf %364, %368 : vector<2x32xf32>
    %370 = arith.addf %312, %369 : vector<2x32xf32>
    %c0_87 = arith.constant 0 : index
    %c6 = arith.constant 6 : index
    %c0_88 = arith.constant 0 : index
    %371 = vector.load %arg11[%c0_87, %c6, %c0_88] : memref<2x8x128xf32, #tpu.memory_space<vmem>>, vector<2x1x128xf32>
    %372 = vector.shape_cast %371 : vector<2x1x128xf32> to vector<2x128xf32>
    %cst_89 = arith.constant dense<0.000000e+00> : vector<2x128xf32>
    %373 = tpu.matmul %341, %13, %cst_89 {dimension_numbers = #tpu.dot_dimension_numbers<[1], [0], [0], [1], [0, 0, 1, 1], [], []>} : vector<2x32xf32>, vector<32x128xf32>, vector<2x128xf32> -> vector<2x128xf32>
    %374 = arith.addf %372, %373 : vector<2x128xf32>
    %375 = vector.extract_strided_slice %374 {offsets = [0, 0], sizes = [2, 32], strides = [1, 1]} : vector<2x128xf32> to vector<2x32xf32>
    %376 = arith.negf %375 : vector<2x32xf32>
    %377 = math.exp %376 : vector<2x32xf32>
    %cst_90 = arith.constant 1.000000e+00 : f32
    %378 = vector.broadcast %cst_90 : f32 to vector<2x32xf32>
    %379 = arith.addf %378, %377 : vector<2x32xf32>
    %380 = arith.divf %378, %379 : vector<2x32xf32>
    %381 = vector.extract_strided_slice %374 {offsets = [0, 32], sizes = [2, 32], strides = [1, 1]} : vector<2x128xf32> to vector<2x32xf32>
    %382 = arith.negf %381 : vector<2x32xf32>
    %383 = math.exp %382 : vector<2x32xf32>
    %cst_91 = arith.constant 1.000000e+00 : f32
    %384 = vector.broadcast %cst_91 : f32 to vector<2x32xf32>
    %385 = arith.addf %384, %383 : vector<2x32xf32>
    %386 = arith.divf %384, %385 : vector<2x32xf32>
    %387 = vector.extract_strided_slice %374 {offsets = [0, 64], sizes = [2, 32], strides = [1, 1]} : vector<2x128xf32> to vector<2x32xf32>
    %388 = math.tanh %387 : vector<2x32xf32>
    %389 = vector.extract_strided_slice %374 {offsets = [0, 96], sizes = [2, 32], strides = [1, 1]} : vector<2x128xf32> to vector<2x32xf32>
    %390 = arith.negf %389 : vector<2x32xf32>
    %391 = math.exp %390 : vector<2x32xf32>
    %cst_92 = arith.constant 1.000000e+00 : f32
    %392 = vector.broadcast %cst_92 : f32 to vector<2x32xf32>
    %393 = arith.addf %392, %391 : vector<2x32xf32>
    %394 = arith.divf %392, %393 : vector<2x32xf32>
    %395 = arith.mulf %386, %339 : vector<2x32xf32>
    %396 = arith.mulf %380, %388 : vector<2x32xf32>
    %397 = arith.addf %395, %396 : vector<2x32xf32>
    %398 = math.tanh %397 : vector<2x32xf32>
    %399 = arith.mulf %394, %398 : vector<2x32xf32>
    %400 = tpu.concatenate %399, %369 in 1 : vector<2x32xf32>, vector<2x32xf32> -> vector<2x64xf32>
    %cst_93 = arith.constant dense<0.000000e+00> : vector<2x128xf32>
    %401 = tpu.matmul %400, %14, %cst_93 {dimension_numbers = #tpu.dot_dimension_numbers<[1], [0], [0], [1], [0, 0, 1, 1], [], []>} : vector<2x64xf32>, vector<64x128xf32>, vector<2x128xf32> -> vector<2x128xf32>
    %402 = arith.addf %401, %17 : vector<2x128xf32>
    %403 = vector.extract_strided_slice %402 {offsets = [0, 0], sizes = [2, 32], strides = [1, 1]} : vector<2x128xf32> to vector<2x32xf32>
    %404 = arith.negf %403 : vector<2x32xf32>
    %405 = math.exp %404 : vector<2x32xf32>
    %cst_94 = arith.constant 1.000000e+00 : f32
    %406 = vector.broadcast %cst_94 : f32 to vector<2x32xf32>
    %407 = arith.addf %406, %405 : vector<2x32xf32>
    %408 = arith.divf %406, %407 : vector<2x32xf32>
    %409 = vector.extract_strided_slice %402 {offsets = [0, 32], sizes = [2, 32], strides = [1, 1]} : vector<2x128xf32> to vector<2x32xf32>
    %410 = arith.negf %409 : vector<2x32xf32>
    %411 = math.exp %410 : vector<2x32xf32>
    %cst_95 = arith.constant 1.000000e+00 : f32
    %412 = vector.broadcast %cst_95 : f32 to vector<2x32xf32>
    %413 = arith.addf %412, %411 : vector<2x32xf32>
    %414 = arith.divf %412, %413 : vector<2x32xf32>
    %415 = vector.extract_strided_slice %402 {offsets = [0, 64], sizes = [2, 32], strides = [1, 1]} : vector<2x128xf32> to vector<2x32xf32>
    %416 = math.tanh %415 : vector<2x32xf32>
    %417 = vector.extract_strided_slice %402 {offsets = [0, 96], sizes = [2, 32], strides = [1, 1]} : vector<2x128xf32> to vector<2x32xf32>
    %418 = arith.negf %417 : vector<2x32xf32>
    %419 = math.exp %418 : vector<2x32xf32>
    %cst_96 = arith.constant 1.000000e+00 : f32
    %420 = vector.broadcast %cst_96 : f32 to vector<2x32xf32>
    %421 = arith.addf %420, %419 : vector<2x32xf32>
    %422 = arith.divf %420, %421 : vector<2x32xf32>
    %423 = arith.mulf %414, %367 : vector<2x32xf32>
    %424 = arith.mulf %408, %416 : vector<2x32xf32>
    %425 = arith.addf %423, %424 : vector<2x32xf32>
    %426 = math.tanh %425 : vector<2x32xf32>
    %427 = arith.mulf %422, %426 : vector<2x32xf32>
    %428 = arith.addf %370, %427 : vector<2x32xf32>
    %c0_97 = arith.constant 0 : index
    %c7 = arith.constant 7 : index
    %c0_98 = arith.constant 0 : index
    %429 = vector.load %arg11[%c0_97, %c7, %c0_98] : memref<2x8x128xf32, #tpu.memory_space<vmem>>, vector<2x1x128xf32>
    %430 = vector.shape_cast %429 : vector<2x1x128xf32> to vector<2x128xf32>
    %cst_99 = arith.constant dense<0.000000e+00> : vector<2x128xf32>
    %431 = tpu.matmul %399, %13, %cst_99 {dimension_numbers = #tpu.dot_dimension_numbers<[1], [0], [0], [1], [0, 0, 1, 1], [], []>} : vector<2x32xf32>, vector<32x128xf32>, vector<2x128xf32> -> vector<2x128xf32>
    %432 = arith.addf %430, %431 : vector<2x128xf32>
    %433 = vector.extract_strided_slice %432 {offsets = [0, 0], sizes = [2, 32], strides = [1, 1]} : vector<2x128xf32> to vector<2x32xf32>
    %434 = arith.negf %433 : vector<2x32xf32>
    %435 = math.exp %434 : vector<2x32xf32>
    %cst_100 = arith.constant 1.000000e+00 : f32
    %436 = vector.broadcast %cst_100 : f32 to vector<2x32xf32>
    %437 = arith.addf %436, %435 : vector<2x32xf32>
    %438 = arith.divf %436, %437 : vector<2x32xf32>
    %439 = vector.extract_strided_slice %432 {offsets = [0, 32], sizes = [2, 32], strides = [1, 1]} : vector<2x128xf32> to vector<2x32xf32>
    %440 = arith.negf %439 : vector<2x32xf32>
    %441 = math.exp %440 : vector<2x32xf32>
    %cst_101 = arith.constant 1.000000e+00 : f32
    %442 = vector.broadcast %cst_101 : f32 to vector<2x32xf32>
    %443 = arith.addf %442, %441 : vector<2x32xf32>
    %444 = arith.divf %442, %443 : vector<2x32xf32>
    %445 = vector.extract_strided_slice %432 {offsets = [0, 64], sizes = [2, 32], strides = [1, 1]} : vector<2x128xf32> to vector<2x32xf32>
    %446 = math.tanh %445 : vector<2x32xf32>
    %447 = vector.extract_strided_slice %432 {offsets = [0, 96], sizes = [2, 32], strides = [1, 1]} : vector<2x128xf32> to vector<2x32xf32>
    %448 = arith.negf %447 : vector<2x32xf32>
    %449 = math.exp %448 : vector<2x32xf32>
    %cst_102 = arith.constant 1.000000e+00 : f32
    %450 = vector.broadcast %cst_102 : f32 to vector<2x32xf32>
    %451 = arith.addf %450, %449 : vector<2x32xf32>
    %452 = arith.divf %450, %451 : vector<2x32xf32>
    %453 = arith.mulf %444, %397 : vector<2x32xf32>
    %454 = arith.mulf %438, %446 : vector<2x32xf32>
    %455 = arith.addf %453, %454 : vector<2x32xf32>
    %456 = math.tanh %455 : vector<2x32xf32>
    %457 = arith.mulf %452, %456 : vector<2x32xf32>
    %458 = tpu.concatenate %457, %427 in 1 : vector<2x32xf32>, vector<2x32xf32> -> vector<2x64xf32>
    %cst_103 = arith.constant dense<0.000000e+00> : vector<2x128xf32>
    %459 = tpu.matmul %458, %14, %cst_103 {dimension_numbers = #tpu.dot_dimension_numbers<[1], [0], [0], [1], [0, 0, 1, 1], [], []>} : vector<2x64xf32>, vector<64x128xf32>, vector<2x128xf32> -> vector<2x128xf32>
    %460 = arith.addf %459, %17 : vector<2x128xf32>
    %461 = vector.extract_strided_slice %460 {offsets = [0, 0], sizes = [2, 32], strides = [1, 1]} : vector<2x128xf32> to vector<2x32xf32>
    %462 = arith.negf %461 : vector<2x32xf32>
    %463 = math.exp %462 : vector<2x32xf32>
    %cst_104 = arith.constant 1.000000e+00 : f32
    %464 = vector.broadcast %cst_104 : f32 to vector<2x32xf32>
    %465 = arith.addf %464, %463 : vector<2x32xf32>
    %466 = arith.divf %464, %465 : vector<2x32xf32>
    %467 = vector.extract_strided_slice %460 {offsets = [0, 32], sizes = [2, 32], strides = [1, 1]} : vector<2x128xf32> to vector<2x32xf32>
    %468 = arith.negf %467 : vector<2x32xf32>
    %469 = math.exp %468 : vector<2x32xf32>
    %cst_105 = arith.constant 1.000000e+00 : f32
    %470 = vector.broadcast %cst_105 : f32 to vector<2x32xf32>
    %471 = arith.addf %470, %469 : vector<2x32xf32>
    %472 = arith.divf %470, %471 : vector<2x32xf32>
    %473 = vector.extract_strided_slice %460 {offsets = [0, 64], sizes = [2, 32], strides = [1, 1]} : vector<2x128xf32> to vector<2x32xf32>
    %474 = math.tanh %473 : vector<2x32xf32>
    %475 = vector.extract_strided_slice %460 {offsets = [0, 96], sizes = [2, 32], strides = [1, 1]} : vector<2x128xf32> to vector<2x32xf32>
    %476 = arith.negf %475 : vector<2x32xf32>
    %477 = math.exp %476 : vector<2x32xf32>
    %cst_106 = arith.constant 1.000000e+00 : f32
    %478 = vector.broadcast %cst_106 : f32 to vector<2x32xf32>
    %479 = arith.addf %478, %477 : vector<2x32xf32>
    %480 = arith.divf %478, %479 : vector<2x32xf32>
    %481 = arith.mulf %472, %425 : vector<2x32xf32>
    %482 = arith.mulf %466, %474 : vector<2x32xf32>
    %483 = arith.addf %481, %482 : vector<2x32xf32>
    %484 = math.tanh %483 : vector<2x32xf32>
    %485 = arith.mulf %480, %484 : vector<2x32xf32>
    %486 = arith.addf %428, %485 : vector<2x32xf32>
    %c0_107 = arith.constant 0 : index
    %c0_108 = arith.constant 0 : index
    %487 = vector.load %arg12[%c0_107, %c0_108] : memref<2x32xf32, #tpu.memory_space<vmem>>, vector<2x32xf32>
    tpu.vector_store %arg12[%c0_107, %c0_108], %457 {strides = array<i32>} : memref<2x32xf32, #tpu.memory_space<vmem>>, vector<2x32xf32>,
    %c0_109 = arith.constant 0 : index
    %c0_110 = arith.constant 0 : index
    %488 = vector.load %arg13[%c0_109, %c0_110] : memref<2x32xf32, #tpu.memory_space<vmem>>, vector<2x32xf32>
    tpu.vector_store %arg13[%c0_109, %c0_110], %455 {strides = array<i32>} : memref<2x32xf32, #tpu.memory_space<vmem>>, vector<2x32xf32>,
    %c0_111 = arith.constant 0 : index
    %c0_112 = arith.constant 0 : index
    %489 = vector.load %arg14[%c0_111, %c0_112] : memref<2x32xf32, #tpu.memory_space<vmem>>, vector<2x32xf32>
    tpu.vector_store %arg14[%c0_111, %c0_112], %485 {strides = array<i32>} : memref<2x32xf32, #tpu.memory_space<vmem>>, vector<2x32xf32>,
    %c0_113 = arith.constant 0 : index
    %c0_114 = arith.constant 0 : index
    %490 = vector.load %arg15[%c0_113, %c0_114] : memref<2x32xf32, #tpu.memory_space<vmem>>, vector<2x32xf32>
    tpu.vector_store %arg15[%c0_113, %c0_114], %483 {strides = array<i32>} : memref<2x32xf32, #tpu.memory_space<vmem>>, vector<2x32xf32>,
    %c0_115 = arith.constant 0 : index
    %c0_116 = arith.constant 0 : index
    %491 = vector.load %arg16[%c0_115, %c0_116] : memref<2x32xf32, #tpu.memory_space<vmem>>, vector<2x32xf32>
    tpu.vector_store %arg16[%c0_115, %c0_116], %486 {strides = array<i32>} : memref<2x32xf32, #tpu.memory_space<vmem>>, vector<2x32xf32>,
    %c1_i32 = arith.constant 1 : i32
    %492 = arith.cmpi eq, %arg1, %c1_i32 : i32
    %493 = arith.extui %492 : i1 to i32
    %c0_i32_117 = arith.constant 0 : i32
    %494 = arith.cmpi ne, %493, %c0_i32_117 : i32
    scf.if %494 {
      %cst_118 = arith.constant 6.250000e-02 : f32
      %495 = vector.broadcast %cst_118 : f32 to vector<2x32xf32>
      %496 = arith.mulf %486, %495 : vector<2x32xf32>
      %c0_119 = arith.constant 0 : index
      %c0_120 = arith.constant 0 : index
      %497 = vector.load %arg8[%c0_119, %c0_120] : memref<32x16xf32, #tpu.memory_space<vmem>>, vector<32x16xf32>
      %cst_121 = arith.constant dense<0.000000e+00> : vector<2x16xf32>
      %498 = tpu.matmul %496, %497, %cst_121 {dimension_numbers = #tpu.dot_dimension_numbers<[1], [0], [0], [1], [0, 0, 1, 1], [], []>} : vector<2x32xf32>, vector<32x16xf32>, vector<2x16xf32> -> vector<2x16xf32>
      %c0_122 = arith.constant 0 : index
      %c0_123 = arith.constant 0 : index
      %499 = vector.load %arg9[%c0_122, %c0_123] : memref<1x16xf32, #tpu.memory_space<vmem>>, vector<1x16xf32>
      %500 = vector.broadcast %499 : vector<1x16xf32> to vector<2x16xf32>
      %501 = arith.addf %498, %500 : vector<2x16xf32>
      %c0_124 = arith.constant 0 : index
      %c0_125 = arith.constant 0 : index
      %502 = vector.load %arg10[%c0_124, %c0_125] : memref<2x16xf32, #tpu.memory_space<vmem>>, vector<2x16xf32>
      tpu.vector_store %arg10[%c0_124, %c0_125], %501 {strides = array<i32>} : memref<2x16xf32, #tpu.memory_space<vmem>>, vector<2x16xf32>,
    } else {
    }
    return
  }
  func.func @transform_0(%arg0: i32, %arg1: i32) -> (i32, i32, i32) {
    %c0_i32 = arith.constant 0 : i32
    %c0_i32_0 = arith.constant 0 : i32
    return %arg0, %arg1, %c0_i32 : i32, i32, i32
  }
  func.func @transform_1(%arg0: i32, %arg1: i32) -> (i32, i32) {
    %c0_i32 = arith.constant 0 : i32
    %c0_i32_0 = arith.constant 0 : i32
    %c0_i32_1 = arith.constant 0 : i32
    return %c0_i32, %c0_i32_0 : i32, i32
  }
  func.func @transform_2(%arg0: i32, %arg1: i32) -> (i32, i32) {
    %c0_i32 = arith.constant 0 : i32
    %c0_i32_0 = arith.constant 0 : i32
    %c0_i32_1 = arith.constant 0 : i32
    return %c0_i32, %c0_i32_0 : i32, i32
  }
  func.func @transform_3(%arg0: i32, %arg1: i32) -> (i32, i32) {
    %c0_i32 = arith.constant 0 : i32
    %c0_i32_0 = arith.constant 0 : i32
    %c0_i32_1 = arith.constant 0 : i32
    return %c0_i32, %c0_i32_0 : i32, i32
  }
  func.func @transform_4(%arg0: i32, %arg1: i32) -> (i32, i32) {
    %c0_i32 = arith.constant 0 : i32
    %c0_i32_0 = arith.constant 0 : i32
    %c0_i32_1 = arith.constant 0 : i32
    return %c0_i32, %c0_i32_0 : i32, i32
  }
  func.func @transform_5(%arg0: i32, %arg1: i32) -> (i32, i32) {
    %c0_i32 = arith.constant 0 : i32
    %c0_i32_0 = arith.constant 0 : i32
    %c0_i32_1 = arith.constant 0 : i32
    return %c0_i32, %c0_i32_0 : i32, i32
  }
  func.func @transform_6(%arg0: i32, %arg1: i32) -> (i32, i32) {
    %c0_i32 = arith.constant 0 : i32
    %c0_i32_0 = arith.constant 0 : i32
    %c0_i32_1 = arith.constant 0 : i32
    return %c0_i32, %c0_i32_0 : i32, i32
  }
  func.func @transform_7(%arg0: i32, %arg1: i32) -> (i32, i32) {
    %c0_i32 = arith.constant 0 : i32
    %c0_i32_0 = arith.constant 0 : i32
    %c0_i32_1 = arith.constant 0 : i32
    return %c0_i32, %c0_i32_0 : i32, i32
  }
  func.func @transform_8(%arg0: i32, %arg1: i32) -> (i32, i32) {
    %c0_i32 = arith.constant 0 : i32
    %c0_i32_0 = arith.constant 0 : i32
    return %arg0, %c0_i32 : i32, i32
  }
}

</mosaic_0001>

<bundles_post_ra>
// kernel: _decoder_rnn_avg_impl.1
= control target key start
LH: loop header
LB: loop body
LE: loop exit
PB: predicated region body
PF: predicated region fallthrough
CT: control target
= control target key end

     0   :  { %13 = vsyncpa [#allocation10], 0  ;;  %s3432_s27 = smov 0   ;;  %s3434_s28 = smov 0   ;;  %s4156_s0 = inlined_call_operand.vmem [shape: f32[2,16,32], index: 0, kind: input, shape index: {}]   ;;  %s4157_s1 = inlined_call_operand.vmem [shape: f32[32,128], index: 1, kind: input, shape index: {}]   ;;  %s4158_s2 = inlined_call_operand.vmem [shape: f32[1,128], index: 2, kind: input, shape index: {}]   ;;  %s4159_s3 = inlined_call_operand.vmem [shape: f32[32,128], index: 3, kind: input, shape index: {}]   ;;  %s4160_s4 = inlined_call_operand.vmem [shape: f32[64,128], index: 4, kind: input, shape index: {}]   ;;  %s4161_s5 = inlined_call_operand.vmem [shape: f32[1,128], index: 5, kind: input, shape index: {}]   ;;  %s4162_s6 = inlined_call_operand.vmem [shape: f32[32,16], index: 6, kind: input, shape index: {}]   ;;  %s4163_s7 = inlined_call_operand.vmem [shape: f32[1,16], index: 7, kind: input, shape index: {}]   ;;  %s4164_s8 = inlined_call_operand.hbm [shape: f32[2,16], index: 8, kind: output, shape index: {}]  }
   0x1   :  { %s3436_s29 = smov 0   ;;  %s3438_s30 = smov 0  }
   0x2   :  { %s3440_s9 = smov 0  }
   0x3 LB: > { %s2606_s10 = sadd.s32 4294967295, %s3376_s9   ;;  %s28_s11 = sadd.s32 1, %s3372_s30  ;;  %s3376_s9 = sphi %s3440_s9, %s19_s9   ;;  %s3372_s30 = sphi %s3438_s30, %s4169_s30   ;;  %s3368_s29 = sphi %s3436_s29, %s4168_s29   ;;  %s3364_s28 = sphi %s3434_s28, %s4167_s28   ;;  %s3360_s27 = sphi %s3432_s27, %s4166_s27  }
   0x4   : > { %p29_p0 = scmp.ge.s32.totalorder %s28_s11, 2  ;;  %p47_p1 = scmp.ne.s32.totalorder %s3364_s28, %s3360_s27 }
   0x5   : > { %p48_p2 = scmp.eq.s32.totalorder %s3376_s9, 0  ;;  %s40_s13 = sadd.s32 1, %s3364_s28 }
   0x6   : > { %s4171_s11 = smov (%p29_p0, %s28_s11), 0  ;;  %p2608_p5 = scmp.ge.s32.totalorder %s3376_s9, 2 }
   0x7   : > { %p49_p3 = por %p48_p2, %p47_p1  ;;  %s36_s12 = ssub.s32 %s3372_s30, %s4171_s11 }
   0x8   : > { %p38_p4 = scmp.eq.s32.totalorder %s36_s12, 0  ;;  %267 = sbr.rel (%p2608_p5) target bundleno = 18 (0x12), region = 44 }
   0xa   : > { %s3468_s14 = scalar_select %p38_p4, %s3364_s28, %s40_s13  }
   0xd   : > { %270 = sbr.rel (!%p49_p3) target bundleno = 18 (0x12), region = 48  ;;  %s272_s15 = sand.u32 (%p49_p3), 1, %s3364_s28  }
   0xe   : > { %s2610_s16 = sshll.u32 (%p49_p3), %s3372_s30, 3  ;;  %s2609_s17 = sshll.u32 (%p49_p3), %s272_s15, 4 }
   0xf   : > { %s279_s20 = scalar_lea.vmem (%p49_p3), %s4156_s0, %s2610_s16  ;;  %s274_s21 = scalar_lea.vmem (%p49_p3), [#allocation8], %s2609_s17 }
  0x10   : > { %v310_v0 = vld [vmem:[%s279_s20] sm:$0xff] (%p49_p3)  ;;  %v312_v1 = vld [vmem:[%s279_s20 + $0x10] sm:$0xff] (%p49_p3) }
  0x11   : > { %311 = vst [vmem:[%s274_s21] sm:$0xff] (%p49_p3), %v310_v0  ;;  %313 = vst [vmem:[%s274_s21 + $0x8] sm:$0xff] (%p49_p3), %v312_v1 }
  0x12 PF: > { %p2611_p6 = scmp.ge.s32.totalorder %s3376_s9, 1  ;;  %p318_p7 = scmp.lt.s32.totalorder %s3376_s9, 3 }
  0x14   : > { %p319_p8 = pnand %p2611_p6, %p318_p7 }
  0x15   : > { %s325_s22 = sand.u32 (!%p319_p8), 1, %s3360_s27   ;;  %p2613_p9 = scmp.ne.s32.totalorder (!%p319_p8), %s3368_s29, 0 }
  0x16   : > { %322 = sbr.rel (%p319_p8) target bundleno = 6523 (0x197b), region = 86  ;;  %s3479_s23 = sshll.u32 (!%p319_p8), %s325_s22, 4 }
  0x17   : > { %s327_s24 = scalar_lea.vmem (!%p319_p8), [#allocation8], %s3479_s23 }
  0x1b   : > { %357 = sbr.rel (%p2613_p9) target bundleno = 36 (0x24), region = 94 }
  0x20   : > { %vm358_vm0 = vcmask 254976   ;;  %v3378_v2 = vmov 0.0  }
  0x21   : > { %359 = vst.msk [vmem:[#allocation3] sm:$0x3] %vm358_vm0, %v3378_v2  ;;  %360 = vst.msk [vmem:[#allocation4] sm:$0x3] %vm358_vm0, %v3378_v2 }
  0x22   : > { %361 = vst.msk [vmem:[#allocation5] sm:$0x3] %vm358_vm0, %v3378_v2  ;;  %362 = vst.msk [vmem:[#allocation6] sm:$0x3] %vm358_vm0, %v3378_v2 }
  0x23   : > { %363 = vst.msk [vmem:[#allocation7] sm:$0x3] %vm358_vm0, %v3378_v2 }
  0x24 PF: > { %v369_v3 = vld [vmem:[%s4157_s1 + $0x18] sm:$0xff]  ;;  %v368_v4 = vld [vmem:[%s4157_s1 + $0x10] sm:$0xff]  ;;  %vm370_vm1 = vcmask 261120   ;;  %v3379_v5 = vmov 0.0   ;;  %v367_v8 = vld [vmem:[%s4157_s1 + $0x8] sm:$0xff]  ;;  %vm3380_vm2 = vmmov 0  }
  0x25   : > { %2788 = vmatprep.subr.mxu0 %v369_v3  ;;  %2799 = vmatprep.subr.mxu1 %v3379_v5  ;;  %v364_v6 = vld [vmem:[%s327_s24] sm:$0xff]  ;;  %v365_v13 = vld [vmem:[%s327_s24 + $0x8] sm:$0xff]  ;;  %s3381_s23 = smov 32   ;;  %s3382_s13 = smov 64   ;;  %vm627_vm3 = vcmask 1041409   ;;  %vm637_vm4 = vcmask 523264  }
  0x26   : > { %v3495_v7 = vld [vmem:[%s4159_s3 + $0x18] sm:$0xff]  ;;  %2789 = vmatpush3.msra.mxu0 %v369_v3  ;;  %2796 = vmatprep.mubr.msk.f32.mxu0 %vm370_vm1, %v364_v6  ;;  %v3504_v9 = vld [vmem:[%s4159_s3 + $0x10] sm:$0xff]  ;;  %v366_v11 = vld [vmem:[%s4157_s1] sm:$0xff]  ;;  %vm2431_vm5 = vcmask 254976   ;;  %s3383_s20 = smov 96   ;;  %p2658_p10 = scmp.ne.s32.totalorder %s3368_s29, 1 }
  0x27   : > { %2790 = vmatprep.subr.mxu0 %v368_v4  ;;  %2800 = vmatpush3.msra.mxu1 %v3495_v7  ;;  %v3514_v12 = vld [vmem:[%s4159_s3 + $0x8] sm:$0xff]  ;;  %v3523_v14 = vld [vmem:[%s4159_s3] sm:$0xff]  ;;  %v3564_v51 = vld [vmem:[%s4160_s4 + $0x38] sm:$0xff] }
  0x28   : > { %v483_v10 = vld [vmem:[#allocation4] sm:$0x3]  ;;  %2791 = vmatpush3.msra.mxu0 %v368_v4  ;;  %2801 = vmatprep.subr.mxu1 %v3379_v5  ;;  %v482_v16 = vld [vmem:[#allocation3] sm:$0x3]  ;;  %v2616_v17 = vld [vmem:[%s4158_s2] ss:$0 sm:$0xff] }
  0x29   : > { %2792 = vmatprep.subr.mxu0 %v367_v8  ;;  %2802 = vmatpush3.msra.mxu1 %v3504_v9  ;;  %v583_v15 = vrot.slane %v483_v10, 1  ;;  %v3569_v52 = vld [vmem:[%s4160_s4 + $0x30] sm:$0xff]  ;;  %v3576_v53 = vld [vmem:[%s4160_s4 + $0x28] sm:$0xff]  ;;  %v3583_v54 = vld [vmem:[%s4160_s4 + $0x20] sm:$0xff] }
  0x2a   : > { %2793 = vmatpush3.msra.mxu0 %v367_v8  ;;  %2803 = vmatprep.subr.mxu1 %v3379_v5  ;;  %v3591_v56 = vld [vmem:[%s4160_s4 + $0x18] sm:$0xff]  ;;  %v3598_v57 = vld [vmem:[%s4160_s4 + $0x10] sm:$0xff]  ;;  %v3606_v59 = vld [vmem:[%s4160_s4 + $0x8] sm:$0xff] }
  0x2b   : > { %2794 = vmatprep.subr.mxu0 %v366_v11  ;;  %2804 = vmatpush3.msra.mxu1 %v3514_v12  ;;  %v484_v60 = vld [vmem:[#allocation5] sm:$0x3]  ;;  %v3616_v61 = vld [vmem:[%s4160_s4] sm:$0xff] }
  0x2c   : > { %2795 = vmatpush3.msra.mxu0 %v366_v11  ;;  %2805 = vmatprep.subr.mxu1 %v3379_v5 }
  0x2d   : > { %2797 = vmatmul.mubr.msk.f32.vlgmr.msra.gmra.mxu0 %vm370_vm1, %v365_v13  ;;  %2806 = vmatpush3.msra.mxu1 %v3523_v14 }
  0x2e   : > { %2807 = vmatprep.mubr.msk.f32.mxu1 %vm3380_vm2, %v3379_v5  ;;  %586 = vrot.lane.b32.xlu1 %v583_v15, %s3381_s23 }
  0x2f   : > { %2808 = vmatmul.mubr.msk.f32.vlgmr.msra.gmra.mxu1 %vm370_vm1, %v482_v16  ;;  %2810 = vmatprep.subr.mxu0 %v3379_v5 }
  0x30   : > { %2829 = vmatprep.subr.mxu1 %v3379_v5  ;;  %2837 = vmatprep.mubr.msk.f32.mxu1 %vm3380_vm2, %v3379_v5 }
  0x31   : > { %2830 = vmatpush3.msra.mxu1 %v3495_v7  ;;  %2826 = vmatprep.mubr.msk.f32.mxu0 %vm3380_vm2, %v3379_v5 }
  0x32   : > { %584 = vrot.lane.b32.xlu1 %v483_v10, %s3381_s23  ;;  %2831 = vmatprep.subr.mxu1 %v3379_v5 }
  0x33   : > { %2832 = vmatpush3.msra.mxu1 %v3504_v9  ;;  %2811 = vmatpush3.msra.mxu0 %v3564_v51 }
  0x34   : > { %2833 = vmatprep.subr.mxu1 %v3379_v5  ;;  %2812 = vmatprep.subr.mxu0 %v3379_v5 }
  0x35   : > { %2834 = vmatpush3.msra.mxu1 %v3514_v12  ;;  %2813 = vmatpush3.msra.mxu0 %v3569_v52 }
  0x36   : > { %2835 = vmatprep.subr.mxu1 %v3379_v5  ;;  %2814 = vmatprep.subr.mxu0 %v3379_v5 }
  0x37   : > { %2836 = vmatpush3.msra.mxu1 %v3523_v14  ;;  %2815 = vmatpush3.msra.mxu0 %v3576_v53 }
  0x38   : > { %2840 = vmatprep.subr.mxu1 %v3379_v5  ;;  %2816 = vmatprep.subr.mxu0 %v3379_v5 }
  0x39   : > { %2817 = vmatpush3.msra.mxu0 %v3583_v54 }
  0x3a   : > { %2818 = vmatprep.subr.mxu0 %v3379_v5 }
  0x3b   : > { %2819 = vmatpush3.msra.mxu0 %v3591_v56 }
  0x3c   : > { %2820 = vmatprep.subr.mxu0 %v3379_v5 }
  0x3d   : > { %2821 = vmatpush3.msra.mxu0 %v3598_v57 }
  0x3e   : > { %2822 = vmatprep.subr.mxu0 %v3379_v5 }
  0x3f   : > { %2823 = vmatpush3.msra.mxu0 %v3606_v59 }
  0x40   : > { %2824 = vmatprep.subr.mxu0 %v3379_v5 }
  0x41   : > { %2825 = vmatpush3.msra.mxu0 %v3616_v61 }
  0x42   : > { %2859 = vmatprep.subr.mxu0 %v3379_v5 }
  0xa0   : > { %v587_v43 = vpop.permute.xlu1 %586 }
  0xa4   : > { %v585_v45 = vpop.permute.xlu1 %584 }
  0xed   : > { %v2798_v18 = vpop.f32.mrf.mxu0 }
  0xee   : > { %v460_v19 = vadd.f32 %v2798_v18, %v2616_v17 }
  0xef   : > { %v443_v20 = vpop.f32.mrf.mxu0  ;;  %v558_v21 = vpop.f32.mrf.mxu1 }
  0xf0   : > { %462 = vst [vmem:[#allocation2 + $0x8] sm:$0xff] %v460_v19  ;;  %v459_v22 = vadd.f32 %v2616_v17, %v443_v20  ;;  %v563_v24 = vrot.slane %v558_v21, 1  ;;  %v3656_v20 = vld [vmem:[%s4161_s5] ss:$0 sm:$0xff] }
  0xf1   : > { %v2809_v23 = vpop.f32.mrf.mxu1 }
  0xf2   : > { %461 = vst [vmem:[#allocation2] sm:$0xff] %v459_v22 }
  0xf7   : > { %v488_v25 = vld [vmem:[#allocation2 + $0x8] sm:$0x1]  ;;  %v745_v17 = vld [vmem:[#allocation2 + $0x9] sm:$0x1] }
  0xf8   : > { %v567_v26 = vadd.f32 %v563_v24, %v488_v25 }
  0xf9   : > { %v487_v27 = vld [vmem:[#allocation2] sm:$0x1]  ;;  %v744_v10 = vld [vmem:[#allocation2 + $0x1] sm:$0x1] }
  0xfa   : > { %v566_v28 = vadd.f32 %v558_v21, %v487_v27  ;;  %3105 = vtanh.f32 %v567_v26  ;;  %v2620_v31 = vmul.f32 -1.442695, %v567_v26 }
  0xfc   : > { %3107 = vtanh.f32 %v566_v28  ;;  %v2619_v32 = vmul.f32 -1.442695, %v566_v28 }
  0xfd   : > { %3109 = vpow2.f32 %v2620_v31 }
  0xfe   : > { %3111 = vpow2.f32 %v2619_v32 }
 0x107   : > { %v3106_v29 = vpop.eup %3105 }
 0x108   : > { %596 = vrot.lane.b32.xlu0 %v3106_v29, %s3382_s13 }
 0x109   : > { %v3108_v30 = vpop.eup %3107 }
 0x10a   : > { %v3110_v33 = vpop.eup %3109 }
 0x10b   : > { %v575_v34 = vadd.f32 1.0, %v3110_v33  ;;  %v3112_v35 = vpop.eup %3111 }
 0x10c   : > { %594 = vrot.lane.b32.xlu0 %v3108_v30, %s3382_s13  ;;  %v574_v36 = vadd.f32 1.0, %v3112_v35 }
 0x10d   : > { %3113 = vrcp.f32 %v575_v34 }
 0x10e   : > { %3115 = vrcp.f32 %v574_v36 }
 0x11a   : > { %v3114_v37 = vpop.eup %3113 }
 0x11b   : > { %v3116_v40 = vpop.eup %3115  ;;  %v591_v44 = vmul.f32 %v3114_v37, %v587_v43  ;;  %v485_v43 = vld [vmem:[#allocation6] sm:$0x3] }
 0x11c   : > { %v590_v48 = vmul.f32 %v3116_v40, %v585_v45 }
 0x17a   : > { %v597_v38 = vpop.permute.xlu0 %596 }
 0x17b   : > { %v601_v39 = vmul.f32 %v3114_v37, %v597_v38 }
 0x17d   : > { %606 = vrot.lane.b32.xlu0 %v601_v39, %s3381_s23 }
 0x17e   : > { %v595_v41 = vpop.permute.xlu0 %594 }
 0x17f   : > { %v600_v42 = vmul.f32 %v3116_v40, %v595_v41 }
 0x181   : > { %604 = vrot.lane.b32.xlu1 %v600_v42, %s3381_s23 }
 0x1ef   : > { %v607_v46 = vpop.permute.xlu0 %606 }
 0x1f0   : > { %v3555_v47 = vadd.f32 %v607_v46, %v591_v44 }
 0x1f2   : > { %3117 = vtanh.f32 %v3555_v47 }
 0x1f3   : > { %v605_v49 = vpop.permute.xlu1 %604 }
 0x1f4   : > { %v3558_v50 = vadd.f32 %v605_v49, %v590_v48 }
 0x1f6   : > { %3119 = vtanh.f32 %v3558_v50 }
 0x1ff   : > { %v3118_v55 = vpop.eup %3117 }
 0x200   : > { %618 = vrot.lane.b32.xlu0 %v3118_v55, %s3382_s13 }
 0x203   : > { %v3120_v58 = vpop.eup %3119 }
 0x204   : > { %616 = vrot.lane.b32.xlu1 %v3120_v58, %s3382_s13 }
 0x208   : > { %633 = vrot.lane.b32.xlu1 %v484_v60, %s3381_s23 }
 0x272   : > { %v619_v62 = vpop.permute.xlu0 %618 }
 0x273   : > { %v623_v63 = vmul.f32 %v3114_v37, %v619_v62 }
 0x275   : > { %v626_v1 = vrot.slane %v623_v63, 7 }
 0x276   : > { %v617_v0 = vpop.permute.xlu1 %616 }
 0x277   : > { %v622_v2 = vmul.f32 %v3116_v40, %v617_v0 }
 0x279   : > { %v628_v3 = vsel %vm627_vm3, %v626_v1, %v622_v2 }
 0x27a   : > { %629 = vrot.lane.b32.xlu0 %v628_v3, %s3381_s23  ;;  %v634_v4 = vpop.permute.xlu1 %633 }
 0x2ec   : > { %v630_v6 = vpop.permute.xlu0 %629 }
 0x2ed   : > { %v636_v8 = vsel %vm370_vm1, %v630_v6, %v634_v4  ;;  %2838 = vmatmul.mubr.msk.f32.vlgmr.msra.gmra.mxu1 %vm370_vm1, %v630_v6 }
 0x2ee   : > { %2827 = vmatmul.mubr.msk.f32.vlgmr.msra.gmra.mxu0 %vm637_vm4, %v636_v8  ;;  %2841 = vmatpush3.msra.mxu1 %v3564_v51 }
 0x2ef   : > { %2842 = vmatprep.subr.mxu1 %v3379_v5  ;;  %2860 = vmatpush3.msra.mxu0 %v3495_v7 }
 0x2f0   : > { %2843 = vmatpush3.msra.mxu1 %v3569_v52  ;;  %2861 = vmatprep.subr.mxu0 %v3379_v5 }
 0x2f1   : > { %2844 = vmatprep.subr.mxu1 %v3379_v5  ;;  %2862 = vmatpush3.msra.mxu0 %v3504_v9 }
 0x2f2   : > { %2845 = vmatpush3.msra.mxu1 %v3576_v53  ;;  %2863 = vmatprep.subr.mxu0 %v3379_v5 }
 0x2f3   : > { %2846 = vmatprep.subr.mxu1 %v3379_v5  ;;  %2864 = vmatpush3.msra.mxu0 %v3514_v12 }
 0x2f4   : > { %2847 = vmatpush3.msra.mxu1 %v3583_v54  ;;  %2865 = vmatprep.subr.mxu0 %v3379_v5 }
 0x2f5   : > { %2848 = vmatprep.subr.mxu1 %v3379_v5  ;;  %2866 = vmatpush3.msra.mxu0 %v3523_v14 }
 0x2f6   : > { %2849 = vmatpush3.msra.mxu1 %v3591_v56  ;;  %2867 = vmatprep.mubr.msk.f32.mxu0 %vm3380_vm2, %v3379_v5 }
 0x2f7   : > { %2850 = vmatprep.subr.mxu1 %v3379_v5  ;;  %2856 = vmatprep.mubr.msk.f32.mxu1 %vm3380_vm2, %v3379_v5 }
 0x2f8   : > { %2851 = vmatpush3.msra.mxu1 %v3598_v57  ;;  %2870 = vmatprep.subr.mxu0 %v3379_v5 }
 0x2f9   : > { %2852 = vmatprep.subr.mxu1 %v3379_v5 }
 0x2fa   : > { %2853 = vmatpush3.msra.mxu1 %v3606_v59 }
 0x2fb   : > { %2854 = vmatprep.subr.mxu1 %v3379_v5 }
 0x2fc   : > { %2855 = vmatpush3.msra.mxu1 %v3616_v61 }
 0x2fd   : > { %2889 = vmatprep.subr.mxu1 %v3379_v5 }
 0x3ad   : > { %v814_v11 = vpop.f32.mrf.mxu1 }
 0x3ae   : > { %v819_v13 = vrot.slane %v814_v11, 1  ;;  %v822_v15 = vadd.f32 %v814_v11, %v744_v10  ;;  %v707_v16 = vpop.f32.mrf.mxu0 }
 0x3af   : > { %v2839_v18 = vpop.f32.mrf.mxu1  ;;  %v708_v22 = vadd.f32 %v3656_v20, %v707_v16 }
 0x3b0   : > { %v823_v19 = vadd.f32 %v819_v13, %v745_v17  ;;  %3121 = vtanh.f32 %v822_v15  ;;  %v2828_v21 = vpop.f32.mrf.mxu0  ;;  %v2624_v26 = vmul.f32 -1.442695, %v822_v15  ;;  %v985_v18 = vld [vmem:[#allocation2 + $0x2] sm:$0x1] }
 0x3b1   : > { %v2622_v28 = vmul.f32 -1.442695, %v708_v22 }
 0x3b2   : > { %3123 = vtanh.f32 %v823_v19  ;;  %v2625_v27 = vmul.f32 -1.442695, %v823_v19 }
 0x3b3   : > { %3125 = vtanh.f32 %v708_v22 }
 0x3b4   : > { %3127 = vpow2.f32 %v2624_v26 }
 0x3b5   : > { %3129 = vpow2.f32 %v2625_v27 }
 0x3b6   : > { %3131 = vpow2.f32 %v2622_v28 }
 0x3bd   : > { %v3122_v23 = vpop.eup %3121 }
 0x3be   : > { %842 = vrot.lane.b32.xlu1 %v3122_v23, %s3382_s13  ;;  %v986_v23 = vld [vmem:[#allocation2 + $0xa] sm:$0x1] }
 0x3bf   : > { %v3124_v24 = vpop.eup %3123 }
 0x3c0   : > { %844 = vrot.lane.b32.xlu0 %v3124_v24, %s3382_s13  ;;  %v3126_v25 = vpop.eup %3125 }
 0x3c1   : > { %v3128_v29 = vpop.eup %3127 }
 0x3c2   : > { %v3130_v30 = vpop.eup %3129  ;;  %v830_v31 = vadd.f32 1.0, %v3128_v29 }
 0x3c3   : > { %v831_v32 = vadd.f32 1.0, %v3130_v30  ;;  %v3132_v33 = vpop.eup %3131 }
 0x3c4   : > { %724 = vrot.lane.b32.xlu0 %v3126_v25, %s3382_s13  ;;  %3133 = vrcp.f32 %v830_v31  ;;  %v714_v34 = vadd.f32 1.0, %v3132_v33 }
 0x3c5   : > { %3135 = vrcp.f32 %v831_v32 }
 0x3c6   : > { %3137 = vrcp.f32 %v714_v34 }
 0x3d1   : > { %v3134_v35 = vpop.eup %3133 }
 0x3d2   : > { %v3136_v38 = vpop.eup %3135  ;;  %v838_v45 = vmul.f32 %v3134_v35, %v3558_v50 }
 0x3d3   : > { %v3138_v41 = vpop.eup %3137  ;;  %v839_v49 = vmul.f32 %v3136_v38, %v3555_v47 }
 0x430   : > { %v843_v36 = vpop.permute.xlu1 %842 }
 0x431   : > { %v848_v37 = vmul.f32 %v3134_v35, %v843_v36 }
 0x432   : > { %v845_v39 = vpop.permute.xlu0 %844 }
 0x433   : > { %852 = vrot.lane.b32.xlu0 %v848_v37, %s3381_s23  ;;  %v849_v40 = vmul.f32 %v3136_v38, %v845_v39 }
 0x435   : > { %854 = vrot.lane.b32.xlu1 %v849_v40, %s3381_s23 }
 0x436   : > { %v725_v42 = vpop.permute.xlu0 %724 }
 0x437   : > { %v727_v44 = vmul.f32 %v3138_v41, %v725_v42 }
 0x439   : > { %719 = vrot.lane.b32.xlu1 %v485_v43, %s3381_s23  ;;  %729 = vrot.lane.b32.xlu0 %v727_v44, %s3381_s23 }
 0x4a5   : > { %v853_v46 = vpop.permute.xlu0 %852 }
 0x4a6   : > { %v3667_v48 = vadd.f32 %v853_v46, %v838_v45 }
 0x4a7   : > { %v855_v55 = vpop.permute.xlu1 %854 }
 0x4a8   : > { %3139 = vtanh.f32 %v3667_v48  ;;  %v3671_v58 = vadd.f32 %v855_v55, %v839_v49 }
 0x4aa   : > { %3141 = vtanh.f32 %v3671_v58 }
 0x4ab   : > { %v720_v60 = vpop.permute.xlu1 %719  ;;  %v730_v63 = vpop.permute.xlu0 %729 }
 0x4ac   : > { %v722_v62 = vmul.f32 %v3138_v41, %v720_v60 }
 0x4ae   : > { %v3674_v0 = vadd.f32 %v730_v63, %v722_v62 }
 0x4b0   : > { %3143 = vtanh.f32 %v3674_v0 }
 0x4b5   : > { %v3140_v50 = vpop.eup %3139 }
 0x4b6   : > { %864 = vrot.lane.b32.xlu0 %v3140_v50, %s3382_s13 }
 0x4b7   : > { %v3142_v1 = vpop.eup %3141 }
 0x4b8   : > { %866 = vrot.lane.b32.xlu1 %v3142_v1, %s3382_s13 }
 0x4bd   : > { %v3144_v47 = vpop.eup %3143 }
 0x4be   : > { %735 = vrot.lane.b32.xlu1 %v3144_v47, %s3382_s13 }
 0x528   : > { %v865_v2 = vpop.permute.xlu0 %864 }
 0x529   : > { %v870_v6 = vmul.f32 %v3134_v35, %v865_v2 }
 0x52a   : > { %v867_v3 = vpop.permute.xlu1 %866 }
 0x52b   : > { %v871_v4 = vmul.f32 %v3136_v38, %v867_v3 }
 0x52d   : > { %v874_v8 = vrot.slane %v871_v4, 7 }
 0x52f   : > { %v875_v10 = vsel %vm627_vm3, %v874_v8, %v870_v6 }
 0x530   : > { %876 = vrot.lane.b32.xlu0 %v875_v10, %s3381_s23  ;;  %v736_v11 = vpop.permute.xlu1 %735 }
 0x531   : > { %v3682_v13 = vmul.f32 %v3138_v41, %v736_v11 }
 0x533   : > { %879 = vrot.lane.b32.xlu1 %v3682_v13, %s3382_s13 }
 0x5a2   : > { %v877_v15 = vpop.permute.xlu0 %876 }
 0x5a3   : > { %2868 = vmatmul.mubr.msk.f32.vlgmr.msra.gmra.mxu0 %vm370_vm1, %v877_v15 }
 0x5a4   : > { %2871 = vmatpush3.msra.mxu0 %v3564_v51  ;;  %2886 = vmatprep.mubr.msk.f32.mxu0 %vm3380_vm2, %v3379_v5 }
 0x5a5   : > { %v880_v16 = vpop.permute.xlu1 %879  ;;  %2872 = vmatprep.subr.mxu0 %v3379_v5 }
 0x5a6   : > { %v882_v17 = vsel %vm370_vm1, %v877_v15, %v880_v16  ;;  %2873 = vmatpush3.msra.mxu0 %v3569_v52 }
 0x5a7   : > { %2857 = vmatmul.mubr.msk.f32.vlgmr.msra.gmra.mxu1 %vm637_vm4, %v882_v17  ;;  %2874 = vmatprep.subr.mxu0 %v3379_v5 }
 0x5a8   : > { %2875 = vmatpush3.msra.mxu0 %v3576_v53  ;;  %2890 = vmatpush3.msra.mxu1 %v3495_v7 }
 0x5a9   : > { %2876 = vmatprep.subr.mxu0 %v3379_v5  ;;  %2891 = vmatprep.subr.mxu1 %v3379_v5 }
 0x5aa   : > { %2877 = vmatpush3.msra.mxu0 %v3583_v54  ;;  %2892 = vmatpush3.msra.mxu1 %v3504_v9 }
 0x5ab   : > { %2878 = vmatprep.subr.mxu0 %v3379_v5  ;;  %2893 = vmatprep.subr.mxu1 %v3379_v5 }
 0x5ac   : > { %2879 = vmatpush3.msra.mxu0 %v3591_v56  ;;  %2894 = vmatpush3.msra.mxu1 %v3514_v12 }
 0x5ad   : > { %2880 = vmatprep.subr.mxu0 %v3379_v5  ;;  %2895 = vmatprep.subr.mxu1 %v3379_v5 }
 0x5ae   : > { %2881 = vmatpush3.msra.mxu0 %v3598_v57  ;;  %2896 = vmatpush3.msra.mxu1 %v3523_v14 }
 0x5af   : > { %2882 = vmatprep.subr.mxu0 %v3379_v5  ;;  %2897 = vmatprep.mubr.msk.f32.mxu1 %vm3380_vm2, %v3379_v5 }
 0x5b0   : > { %2883 = vmatpush3.msra.mxu0 %v3606_v59  ;;  %2900 = vmatprep.subr.mxu1 %v3379_v5 }
 0x5b1   : > { %2884 = vmatprep.subr.mxu0 %v3379_v5 }
 0x5b2   : > { %2885 = vmatpush3.msra.mxu0 %v3616_v61 }
 0x5b3   : > { %2919 = vmatprep.subr.mxu0 %v3379_v5 }
 0x663   : > { %v1055_v19 = vpop.f32.mrf.mxu0 }
 0x664   : > { %v1060_v21 = vrot.slane %v1055_v19, 1  ;;  %v1063_v22 = vadd.f32 %v1055_v19, %v985_v18 }
 0x665   : > { %v2869_v24 = vpop.f32.mrf.mxu0 }
 0x666   : > { %v1064_v25 = vadd.f32 %v1060_v21, %v986_v23  ;;  %3145 = vtanh.f32 %v1063_v22  ;;  %v2629_v32 = vmul.f32 -1.442695, %v1063_v22  ;;  %v1226_v24 = vld [vmem:[#allocation2 + $0x3] sm:$0x1] }
 0x667   : > { %v952_v26 = vpop.f32.mrf.mxu1 }
 0x668   : > { %3147 = vtanh.f32 %v1064_v25  ;;  %v953_v27 = vadd.f32 %v3656_v20, %v952_v26  ;;  %v2630_v33 = vmul.f32 -1.442695, %v1064_v25 }
 0x669   : > { %v2858_v28 = vpop.f32.mrf.mxu1 }
 0x66a   : > { %3149 = vtanh.f32 %v953_v27  ;;  %v2627_v34 = vmul.f32 -1.442695, %v953_v27  ;;  %v1227_v28 = vld [vmem:[#allocation2 + $0xb] sm:$0x1] }
 0x66b   : > { %3151 = vpow2.f32 %v2629_v32 }
 0x66c   : > { %3153 = vpow2.f32 %v2630_v33 }
 0x66d   : > { %3155 = vpow2.f32 %v2627_v34 }
 0x673   : > { %v3146_v29 = vpop.eup %3145 }
 0x674   : > { %1083 = vrot.lane.b32.xlu1 %v3146_v29, %s3382_s13 }
 0x675   : > { %v3148_v30 = vpop.eup %3147 }
 0x676   : > { %1085 = vrot.lane.b32.xlu0 %v3148_v30, %s3382_s13 }
 0x677   : > { %v3150_v31 = vpop.eup %3149 }
 0x678   : > { %v3152_v35 = vpop.eup %3151 }
 0x679   : > { %v3154_v36 = vpop.eup %3153  ;;  %v1071_v37 = vadd.f32 1.0, %v3152_v35 }
 0x67a   : > { %965 = vrot.lane.b32.xlu0 %v3150_v31, %s3382_s13  ;;  %v1072_v38 = vadd.f32 1.0, %v3154_v36  ;;  %v3156_v39 = vpop.eup %3155 }
 0x67b   : > { %3157 = vrcp.f32 %v1071_v37  ;;  %v959_v40 = vadd.f32 1.0, %v3156_v39 }
 0x67c   : > { %3159 = vrcp.f32 %v1072_v38 }
 0x67d   : > { %3161 = vrcp.f32 %v959_v40 }
 0x688   : > { %v3158_v41 = vpop.eup %3157 }
 0x689   : > { %v3160_v44 = vpop.eup %3159  ;;  %v1079_v62 = vmul.f32 %v3158_v41, %v3667_v48 }
 0x68a   : > { %v3162_v49 = vpop.eup %3161  ;;  %v1080_v1 = vmul.f32 %v3160_v44, %v3671_v58 }
 0x68b   : > { %v963_v3 = vmul.f32 %v3162_v49, %v3674_v0 }
 0x6e6   : > { %v1084_v42 = vpop.permute.xlu1 %1083 }
 0x6e7   : > { %v1089_v43 = vmul.f32 %v3158_v41, %v1084_v42 }
 0x6e8   : > { %v1086_v45 = vpop.permute.xlu0 %1085 }
 0x6e9   : > { %1093 = vrot.lane.b32.xlu0 %v1089_v43, %s3381_s23  ;;  %v1090_v46 = vmul.f32 %v3160_v44, %v1086_v45 }
 0x6eb   : > { %1095 = vrot.lane.b32.xlu1 %v1090_v46, %s3381_s23 }
 0x6ec   : > { %v966_v55 = vpop.permute.xlu0 %965 }
 0x6ed   : > { %v968_v60 = vmul.f32 %v3162_v49, %v966_v55 }
 0x6ef   : > { %970 = vrot.lane.b32.xlu1 %v968_v60, %s3381_s23 }
 0x75b   : > { %v1094_v63 = vpop.permute.xlu0 %1093 }
 0x75c   : > { %v3725_v50 = vadd.f32 %v1094_v63, %v1079_v62 }
 0x75d   : > { %v1096_v47 = vpop.permute.xlu1 %1095 }
 0x75e   : > { %3163 = vtanh.f32 %v3725_v50  ;;  %v3729_v2 = vadd.f32 %v1096_v47, %v1080_v1 }
 0x760   : > { %3165 = vtanh.f32 %v3729_v2 }
 0x761   : > { %v971_v4 = vpop.permute.xlu1 %970 }
 0x762   : > { %v3733_v6 = vadd.f32 %v971_v4, %v963_v3 }
 0x764   : > { %3167 = vtanh.f32 %v3733_v6 }
 0x76b   : > { %v3164_v48 = vpop.eup %3163 }
 0x76c   : > { %1105 = vrot.lane.b32.xlu1 %v3164_v48, %s3382_s13 }
 0x76d   : > { %v3166_v8 = vpop.eup %3165 }
 0x76e   : > { %1107 = vrot.lane.b32.xlu0 %v3166_v8, %s3382_s13 }
 0x771   : > { %v3168_v58 = vpop.eup %3167 }
 0x772   : > { %976 = vrot.lane.b32.xlu0 %v3168_v58, %s3382_s13 }
 0x7de   : > { %v1106_v10 = vpop.permute.xlu1 %1105 }
 0x7df   : > { %v1111_v16 = vmul.f32 %v3158_v41, %v1106_v10 }
 0x7e0   : > { %v1108_v11 = vpop.permute.xlu0 %1107 }
 0x7e1   : > { %v1112_v15 = vmul.f32 %v3160_v44, %v1108_v11 }
 0x7e3   : > { %v1115_v17 = vrot.slane %v1112_v15, 7 }
 0x7e4   : > { %v977_v0 = vpop.permute.xlu0 %976 }
 0x7e5   : > { %v3739_v18 = vmul.f32 %v3162_v49, %v977_v0  ;;  %v1116_v19 = vsel %vm627_vm3, %v1115_v17, %v1111_v16 }
 0x7e6   : > { %1117 = vrot.lane.b32.xlu1 %v1116_v19, %s3381_s23 }
 0x7e7   : > { %1120 = vrot.lane.b32.xlu0 %v3739_v18, %s3382_s13 }
 0x858   : > { %v1118_v21 = vpop.permute.xlu1 %1117 }
 0x859   : > { %v1121_v22 = vpop.permute.xlu0 %1120  ;;  %2898 = vmatmul.mubr.msk.f32.vlgmr.msra.gmra.mxu1 %vm370_vm1, %v1118_v21 }
 0x85a   : > { %v1123_v23 = vsel %vm370_vm1, %v1118_v21, %v1121_v22  ;;  %2901 = vmatpush3.msra.mxu1 %v3564_v51  ;;  %2916 = vmatprep.mubr.msk.f32.mxu1 %vm3380_vm2, %v3379_v5 }
 0x85b   : > { %2887 = vmatmul.mubr.msk.f32.vlgmr.msra.gmra.mxu0 %vm637_vm4, %v1123_v23  ;;  %2902 = vmatprep.subr.mxu1 %v3379_v5 }
 0x85c   : > { %2903 = vmatpush3.msra.mxu1 %v3569_v52  ;;  %2920 = vmatpush3.msra.mxu0 %v3495_v7 }
 0x85d   : > { %2904 = vmatprep.subr.mxu1 %v3379_v5  ;;  %2921 = vmatprep.subr.mxu0 %v3379_v5 }
 0x85e   : > { %2905 = vmatpush3.msra.mxu1 %v3576_v53  ;;  %2922 = vmatpush3.msra.mxu0 %v3504_v9 }
 0x85f   : > { %2906 = vmatprep.subr.mxu1 %v3379_v5  ;;  %2923 = vmatprep.subr.mxu0 %v3379_v5 }
 0x860   : > { %2907 = vmatpush3.msra.mxu1 %v3583_v54  ;;  %2924 = vmatpush3.msra.mxu0 %v3514_v12 }
 0x861   : > { %2908 = vmatprep.subr.mxu1 %v3379_v5  ;;  %2925 = vmatprep.subr.mxu0 %v3379_v5 }
 0x862   : > { %2909 = vmatpush3.msra.mxu1 %v3591_v56  ;;  %2926 = vmatpush3.msra.mxu0 %v3523_v14 }
 0x863   : > { %2910 = vmatprep.subr.mxu1 %v3379_v5  ;;  %2927 = vmatprep.mubr.msk.f32.mxu0 %vm3380_vm2, %v3379_v5 }
 0x864   : > { %2911 = vmatpush3.msra.mxu1 %v3598_v57  ;;  %2930 = vmatprep.subr.mxu0 %v3379_v5 }
 0x865   : > { %2912 = vmatprep.subr.mxu1 %v3379_v5 }
 0x866   : > { %2913 = vmatpush3.msra.mxu1 %v3606_v59 }
 0x867   : > { %2914 = vmatprep.subr.mxu1 %v3379_v5 }
 0x868   : > { %2915 = vmatpush3.msra.mxu1 %v3616_v61 }
 0x869   : > { %2949 = vmatprep.subr.mxu1 %v3379_v5 }
 0x919   : > { %v1296_v25 = vpop.f32.mrf.mxu1 }
 0x91a   : > { %v1301_v26 = vrot.slane %v1296_v25, 1  ;;  %v1304_v27 = vadd.f32 %v1296_v25, %v1226_v24 }
 0x91b   : > { %v1193_v29 = vpop.f32.mrf.mxu0  ;;  %v2899_v30 = vpop.f32.mrf.mxu1 }
 0x91c   : > { %v1305_v31 = vadd.f32 %v1301_v26, %v1227_v28  ;;  %3169 = vtanh.f32 %v1304_v27  ;;  %v1194_v33 = vadd.f32 %v3656_v20, %v1193_v29  ;;  %v2634_v37 = vmul.f32 -1.442695, %v1304_v27  ;;  %v1468_v30 = vld [vmem:[#allocation2 + $0xc] sm:$0x1] }
 0x91d   : > { %v2888_v32 = vpop.f32.mrf.mxu0 }
 0x91e   : > { %3171 = vtanh.f32 %v1305_v31  ;;  %v2635_v38 = vmul.f32 -1.442695, %v1305_v31  ;;  %v2632_v39 = vmul.f32 -1.442695, %v1194_v33 }
 0x91f   : > { %3173 = vtanh.f32 %v1194_v33 }
 0x920   : > { %3175 = vpow2.f32 %v2634_v37 }
 0x921   : > { %3177 = vpow2.f32 %v2635_v38 }
 0x922   : > { %3179 = vpow2.f32 %v2632_v39 }
 0x929   : > { %v3170_v34 = vpop.eup %3169 }
 0x92a   : > { %1324 = vrot.lane.b32.xlu0 %v3170_v34, %s3382_s13 }
 0x92b   : > { %v3172_v35 = vpop.eup %3171 }
 0x92c   : > { %1326 = vrot.lane.b32.xlu1 %v3172_v35, %s3382_s13  ;;  %v3174_v36 = vpop.eup %3173 }
 0x92d   : > { %v3176_v40 = vpop.eup %3175 }
 0x92e   : > { %v3178_v41 = vpop.eup %3177  ;;  %v1312_v42 = vadd.f32 1.0, %v3176_v40 }
 0x92f   : > { %v1313_v43 = vadd.f32 1.0, %v3178_v41  ;;  %v3180_v44 = vpop.eup %3179 }
 0x930   : > { %1206 = vrot.lane.b32.xlu1 %v3174_v36, %s3382_s13  ;;  %3181 = vrcp.f32 %v1312_v42  ;;  %v1200_v45 = vadd.f32 1.0, %v3180_v44 }
 0x931   : > { %3183 = vrcp.f32 %v1313_v43 }
 0x932   : > { %3185 = vrcp.f32 %v1200_v45 }
 0x93d   : > { %v3182_v46 = vpop.eup %3181 }
 0x93e   : > { %v3184_v60 = vpop.eup %3183  ;;  %v1320_v4 = vmul.f32 %v3182_v46, %v3725_v50 }
 0x93f   : > { %v3186_v1 = vpop.eup %3185  ;;  %v1321_v58 = vmul.f32 %v3184_v60, %v3729_v2 }
 0x940   : > { %v1204_v15 = vmul.f32 %v3186_v1, %v3733_v6 }
 0x99c   : > { %v1325_v49 = vpop.permute.xlu0 %1324 }
 0x99d   : > { %v1330_v55 = vmul.f32 %v3182_v46, %v1325_v49 }
 0x99e   : > { %v1327_v62 = vpop.permute.xlu1 %1326 }
 0x99f   : > { %1334 = vrot.lane.b32.xlu1 %v1330_v55, %s3381_s23  ;;  %v1331_v63 = vmul.f32 %v3184_v60, %v1327_v62 }
 0x9a1   : > { %1336 = vrot.lane.b32.xlu0 %v1331_v63, %s3381_s23 }
 0x9a2   : > { %v1207_v47 = vpop.permute.xlu1 %1206 }
 0x9a3   : > { %v1209_v3 = vmul.f32 %v3186_v1, %v1207_v47 }
 0x9a5   : > { %1211 = vrot.lane.b32.xlu0 %v1209_v3, %s3381_s23 }
 0xa11   : > { %v1335_v48 = vpop.permute.xlu1 %1334 }
 0xa12   : > { %v3784_v8 = vadd.f32 %v1335_v48, %v1320_v4 }
 0xa13   : > { %v1337_v10 = vpop.permute.xlu0 %1336 }
 0xa14   : > { %3187 = vtanh.f32 %v3784_v8  ;;  %v3788_v11 = vadd.f32 %v1337_v10, %v1321_v58 }
 0xa16   : > { %3189 = vtanh.f32 %v3788_v11 }
 0xa17   : > { %v1212_v16 = vpop.permute.xlu0 %1211 }
 0xa18   : > { %v3792_v17 = vadd.f32 %v1212_v16, %v1204_v15 }
 0xa1a   : > { %3191 = vtanh.f32 %v3792_v17 }
 0xa21   : > { %v3188_v50 = vpop.eup %3187 }
 0xa22   : > { %1346 = vrot.lane.b32.xlu0 %v3188_v50, %s3382_s13 }
 0xa23   : > { %v3190_v0 = vpop.eup %3189 }
 0xa24   : > { %1348 = vrot.lane.b32.xlu1 %v3190_v0, %s3382_s13 }
 0xa27   : > { %v3192_v2 = vpop.eup %3191 }
 0xa28   : > { %1217 = vrot.lane.b32.xlu1 %v3192_v2, %s3382_s13 }
 0xa94   : > { %v1347_v19 = vpop.permute.xlu0 %1346 }
 0xa95   : > { %v1352_v23 = vmul.f32 %v3182_v46, %v1347_v19 }
 0xa96   : > { %v1349_v21 = vpop.permute.xlu1 %1348 }
 0xa97   : > { %v1353_v22 = vmul.f32 %v3184_v60, %v1349_v21 }
 0xa99   : > { %v1356_v24 = vrot.slane %v1353_v22, 7 }
 0xa9a   : > { %v1218_v6 = vpop.permute.xlu1 %1217 }
 0xa9b   : > { %v3798_v25 = vmul.f32 %v3186_v1, %v1218_v6  ;;  %v1357_v26 = vsel %vm627_vm3, %v1356_v24, %v1352_v23 }
 0xa9c   : > { %1358 = vrot.lane.b32.xlu0 %v1357_v26, %s3381_s23 }
 0xa9d   : > { %1361 = vrot.lane.b32.xlu1 %v3798_v25, %s3382_s13 }
 0xb0e   : > { %v1359_v27 = vpop.permute.xlu0 %1358 }
 0xb0f   : > { %2928 = vmatmul.mubr.msk.f32.vlgmr.msra.gmra.mxu0 %vm370_vm1, %v1359_v27  ;;  %v1362_v28 = vpop.permute.xlu1 %1361 }
 0xb10   : > { %v1364_v29 = vsel %vm370_vm1, %v1359_v27, %v1362_v28  ;;  %2931 = vmatpush3.msra.mxu0 %v3564_v51  ;;  %2946 = vmatprep.mubr.msk.f32.mxu0 %vm3380_vm2, %v3379_v5 }
 0xb11   : > { %2917 = vmatmul.mubr.msk.f32.vlgmr.msra.gmra.mxu1 %vm637_vm4, %v1364_v29  ;;  %2932 = vmatprep.subr.mxu0 %v3379_v5 }
 0xb12   : > { %2933 = vmatpush3.msra.mxu0 %v3569_v52  ;;  %2950 = vmatpush3.msra.mxu1 %v3495_v7  ;;  %v1467_v7 = vld [vmem:[#allocation2 + $0x4] sm:$0x1] }
 0xb13   : > { %2934 = vmatprep.subr.mxu0 %v3379_v5  ;;  %2951 = vmatprep.subr.mxu1 %v3379_v5 }
 0xb14   : > { %2935 = vmatpush3.msra.mxu0 %v3576_v53  ;;  %2952 = vmatpush3.msra.mxu1 %v3504_v9 }
 0xb15   : > { %2936 = vmatprep.subr.mxu0 %v3379_v5  ;;  %2953 = vmatprep.subr.mxu1 %v3379_v5 }
 0xb16   : > { %2937 = vmatpush3.msra.mxu0 %v3583_v54  ;;  %2954 = vmatpush3.msra.mxu1 %v3514_v12 }
 0xb17   : > { %2938 = vmatprep.subr.mxu0 %v3379_v5  ;;  %2955 = vmatprep.subr.mxu1 %v3379_v5 }
 0xb18   : > { %2939 = vmatpush3.msra.mxu0 %v3591_v56  ;;  %2956 = vmatpush3.msra.mxu1 %v3523_v14 }
 0xb19   : > { %2940 = vmatprep.subr.mxu0 %v3379_v5  ;;  %2957 = vmatprep.mubr.msk.f32.mxu1 %vm3380_vm2, %v3379_v5 }
 0xb1a   : > { %2941 = vmatpush3.msra.mxu0 %v3598_v57  ;;  %2960 = vmatprep.subr.mxu1 %v3379_v5 }
 0xb1b   : > { %2942 = vmatprep.subr.mxu0 %v3379_v5 }
 0xb1c   : > { %2943 = vmatpush3.msra.mxu0 %v3606_v59 }
 0xb1d   : > { %2944 = vmatprep.subr.mxu0 %v3379_v5 }
 0xb1e   : > { %2945 = vmatpush3.msra.mxu0 %v3616_v61 }
 0xb1f   : > { %2979 = vmatprep.subr.mxu0 %v3379_v5 }
 0xbcf   : > { %v1537_v9 = vpop.f32.mrf.mxu0 }
 0xbd0   : > { %v1542_v12 = vrot.slane %v1537_v9, 1  ;;  %v1545_v14 = vadd.f32 %v1537_v9, %v1467_v7 }
 0xbd1   : > { %v1434_v31 = vpop.f32.mrf.mxu1  ;;  %v2929_v32 = vpop.f32.mrf.mxu0 }
 0xbd2   : > { %v1546_v33 = vadd.f32 %v1542_v12, %v1468_v30  ;;  %3193 = vtanh.f32 %v1545_v14  ;;  %v1435_v35 = vadd.f32 %v3656_v20, %v1434_v31  ;;  %v2639_v39 = vmul.f32 -1.442695, %v1545_v14  ;;  %v3874_v14 = vld [vmem:[%s4159_s3 + $0x18] sm:$0xff]  ;;  %v1709_v32 = vld [vmem:[#allocation2 + $0xd] sm:$0x1] }
 0xbd3   : > { %v2918_v34 = vpop.f32.mrf.mxu1 }
 0xbd4   : > { %3195 = vtanh.f32 %v1546_v33  ;;  %v2640_v40 = vmul.f32 -1.442695, %v1546_v33  ;;  %v2637_v41 = vmul.f32 -1.442695, %v1435_v35 }
 0xbd5   : > { %3197 = vtanh.f32 %v1435_v35 }
 0xbd6   : > { %3199 = vpow2.f32 %v2639_v39 }
 0xbd7   : > { %3201 = vpow2.f32 %v2640_v40 }
 0xbd8   : > { %3203 = vpow2.f32 %v2637_v41 }
 0xbdf   : > { %v3194_v36 = vpop.eup %3193 }
 0xbe0   : > { %1565 = vrot.lane.b32.xlu1 %v3194_v36, %s3382_s13 }
 0xbe1   : > { %v3196_v37 = vpop.eup %3195 }
 0xbe2   : > { %1567 = vrot.lane.b32.xlu0 %v3196_v37, %s3382_s13  ;;  %v3198_v38 = vpop.eup %3197 }
 0xbe3   : > { %v3200_v42 = vpop.eup %3199 }
 0xbe4   : > { %v3202_v43 = vpop.eup %3201  ;;  %v1553_v44 = vadd.f32 1.0, %v3200_v42 }
 0xbe5   : > { %v1554_v45 = vadd.f32 1.0, %v3202_v43  ;;  %v3204_v46 = vpop.eup %3203 }
 0xbe6   : > { %1447 = vrot.lane.b32.xlu0 %v3198_v38, %s3382_s13  ;;  %3205 = vrcp.f32 %v1553_v44  ;;  %v1441_v49 = vadd.f32 1.0, %v3204_v46 }
 0xbe7   : > { %3207 = vrcp.f32 %v1554_v45 }
 0xbe8   : > { %3209 = vrcp.f32 %v1441_v49 }
 0xbf3   : > { %v3206_v55 = vpop.eup %3205 }
 0xbf4   : > { %v3208_v63 = vpop.eup %3207  ;;  %v1561_v58 = vmul.f32 %v3206_v55, %v3784_v8 }
 0xbf5   : > { %v3210_v3 = vpop.eup %3209  ;;  %v1562_v16 = vmul.f32 %v3208_v63, %v3788_v11 }
 0xbf6   : > { %v1445_v2 = vmul.f32 %v3210_v3, %v3792_v17 }
 0xc52   : > { %v1566_v60 = vpop.permute.xlu1 %1565 }
 0xc53   : > { %v1571_v62 = vmul.f32 %v3206_v55, %v1566_v60 }
 0xc54   : > { %v1568_v1 = vpop.permute.xlu0 %1567 }
 0xc55   : > { %1575 = vrot.lane.b32.xlu0 %v1571_v62, %s3381_s23  ;;  %v1572_v47 = vmul.f32 %v3208_v63, %v1568_v1 }
 0xc57   : > { %1577 = vrot.lane.b32.xlu1 %v1572_v47, %s3381_s23 }
 0xc58   : > { %v1448_v4 = vpop.permute.xlu0 %1447 }
 0xc59   : > { %v1450_v48 = vmul.f32 %v3210_v3, %v1448_v4 }
 0xc5b   : > { %1452 = vrot.lane.b32.xlu1 %v1450_v48, %s3381_s23 }
 0xcc7   : > { %v1576_v10 = vpop.permute.xlu0 %1575 }
 0xcc8   : > { %v3843_v15 = vadd.f32 %v1576_v10, %v1561_v58 }
 0xcc9   : > { %v1578_v50 = vpop.permute.xlu1 %1577 }
 0xcca   : > { %3211 = vtanh.f32 %v3843_v15  ;;  %v3847_v0 = vadd.f32 %v1578_v50, %v1562_v16 }
 0xccc   : > { %3213 = vtanh.f32 %v3847_v0 }
 0xccd   : > { %v1453_v19 = vpop.permute.xlu1 %1452 }
 0xcce   : > { %v3851_v21 = vadd.f32 %v1453_v19, %v1445_v2 }
 0xcd0   : > { %3215 = vtanh.f32 %v3851_v21 }
 0xcd7   : > { %v3212_v8 = vpop.eup %3211 }
 0xcd8   : > { %1587 = vrot.lane.b32.xlu1 %v3212_v8, %s3382_s13 }
 0xcd9   : > { %v3214_v22 = vpop.eup %3213 }
 0xcda   : > { %1589 = vrot.lane.b32.xlu0 %v3214_v22, %s3382_s13 }
 0xcdd   : > { %v3216_v11 = vpop.eup %3215 }
 0xcde   : > { %1458 = vrot.lane.b32.xlu0 %v3216_v11, %s3382_s13 }
 0xd4a   : > { %v1588_v23 = vpop.permute.xlu1 %1587 }
 0xd4b   : > { %v1593_v26 = vmul.f32 %v3206_v55, %v1588_v23 }
 0xd4c   : > { %v1590_v24 = vpop.permute.xlu0 %1589 }
 0xd4d   : > { %v1594_v6 = vmul.f32 %v3208_v63, %v1590_v24 }
 0xd4f   : > { %v1597_v27 = vrot.slane %v1594_v6, 7 }
 0xd50   : > { %v1459_v17 = vpop.permute.xlu0 %1458 }
 0xd51   : > { %v3857_v28 = vmul.f32 %v3210_v3, %v1459_v17  ;;  %v1598_v29 = vsel %vm627_vm3, %v1597_v27, %v1593_v26 }
 0xd52   : > { %1599 = vrot.lane.b32.xlu1 %v1598_v29, %s3381_s23 }
 0xd53   : > { %1602 = vrot.lane.b32.xlu0 %v3857_v28, %s3382_s13 }
 0xdc4   : > { %v1600_v7 = vpop.permute.xlu1 %1599 }
 0xdc5   : > { %2958 = vmatmul.mubr.msk.f32.vlgmr.msra.gmra.mxu1 %vm370_vm1, %v1600_v7  ;;  %v1603_v9 = vpop.permute.xlu0 %1602 }
 0xdc6   : > { %v1605_v12 = vsel %vm370_vm1, %v1600_v7, %v1603_v9  ;;  %2961 = vmatpush3.msra.mxu1 %v3564_v51  ;;  %2976 = vmatprep.mubr.msk.f32.mxu1 %vm3380_vm2, %v3379_v5  ;;  %v3883_v51 = vld [vmem:[%s4159_s3 + $0x10] sm:$0xff] }
 0xdc7   : > { %2947 = vmatmul.mubr.msk.f32.vlgmr.msra.gmra.mxu0 %vm637_vm4, %v1605_v12  ;;  %2962 = vmatprep.subr.mxu1 %v3379_v5  ;;  %v3947_v12 = vld [vmem:[%s4160_s4 + $0x38] sm:$0xff] }
 0xdc8   : > { %2963 = vmatpush3.msra.mxu1 %v3569_v52  ;;  %2980 = vmatpush3.msra.mxu0 %v3874_v14  ;;  %v3892_v52 = vld [vmem:[%s4159_s3 + $0x8] sm:$0xff] }
 0xdc9   : > { %2964 = vmatprep.subr.mxu1 %v3379_v5  ;;  %2981 = vmatprep.subr.mxu0 %v3379_v5 }
 0xdca   : > { %2965 = vmatpush3.msra.mxu1 %v3576_v53  ;;  %2982 = vmatpush3.msra.mxu0 %v3883_v51  ;;  %v3901_v53 = vld [vmem:[%s4159_s3] sm:$0xff] }
 0xdcb   : > { %2966 = vmatprep.subr.mxu1 %v3379_v5  ;;  %2983 = vmatprep.subr.mxu0 %v3379_v5 }
 0xdcc   : > { %2967 = vmatpush3.msra.mxu1 %v3583_v54  ;;  %2984 = vmatpush3.msra.mxu0 %v3892_v52  ;;  %v1708_v54 = vld [vmem:[#allocation2 + $0x5] sm:$0x1] }
 0xdcd   : > { %2968 = vmatprep.subr.mxu1 %v3379_v5  ;;  %2985 = vmatprep.subr.mxu0 %v3379_v5 }
 0xdce   : > { %2969 = vmatpush3.msra.mxu1 %v3591_v56  ;;  %2986 = vmatpush3.msra.mxu0 %v3901_v53 }
 0xdcf   : > { %2970 = vmatprep.subr.mxu1 %v3379_v5  ;;  %2987 = vmatprep.mubr.msk.f32.mxu0 %vm3380_vm2, %v3379_v5 }
 0xdd0   : > { %2971 = vmatpush3.msra.mxu1 %v3598_v57  ;;  %2990 = vmatprep.subr.mxu0 %v3379_v5 }
 0xdd1   : > { %2972 = vmatprep.subr.mxu1 %v3379_v5 }
 0xdd2   : > { %2973 = vmatpush3.msra.mxu1 %v3606_v59 }
 0xdd3   : > { %2974 = vmatprep.subr.mxu1 %v3379_v5 }
 0xdd4   : > { %2975 = vmatpush3.msra.mxu1 %v3616_v61 }
 0xdd5   : > { %3009 = vmatprep.subr.mxu1 %v3379_v5 }
 0xe85   : > { %v1778_v56 = vpop.f32.mrf.mxu1 }
 0xe86   : > { %v1783_v30 = vrot.slane %v1778_v56, 1  ;;  %v1786_v31 = vadd.f32 %v1778_v56, %v1708_v54  ;;  %v3957_v54 = vld [vmem:[%s4160_s4 + $0x30] sm:$0xff]  ;;  %v3966_v56 = vld [vmem:[%s4160_s4 + $0x28] sm:$0xff] }
 0xe87   : > { %v1675_v33 = vpop.f32.mrf.mxu0  ;;  %v2959_v34 = vpop.f32.mrf.mxu1 }
 0xe88   : > { %v1787_v57 = vadd.f32 %v1783_v30, %v1709_v32  ;;  %3217 = vtanh.f32 %v1786_v31  ;;  %v1676_v36 = vadd.f32 %v3656_v20, %v1675_v33  ;;  %v2644_v38 = vmul.f32 -1.442695, %v1786_v31  ;;  %v4009_v30 = vld [vmem:[%s4160_s4] sm:$0xff] }
 0xe89   : > { %v2948_v35 = vpop.f32.mrf.mxu0  ;;  %v1949_v31 = vld [vmem:[#allocation2 + $0x6] sm:$0x1] }
 0xe8a   : > { %3219 = vtanh.f32 %v1787_v57  ;;  %v2645_v39 = vmul.f32 -1.442695, %v1787_v57  ;;  %v2642_v40 = vmul.f32 -1.442695, %v1676_v36  ;;  %v1950_v57 = vld [vmem:[#allocation2 + $0xe] sm:$0x1] }
 0xe8b   : > { %3221 = vtanh.f32 %v1676_v36 }
 0xe8c   : > { %3223 = vpow2.f32 %v2644_v38 }
 0xe8d   : > { %3225 = vpow2.f32 %v2645_v39 }
 0xe8e   : > { %3227 = vpow2.f32 %v2642_v40 }
 0xe95   : > { %v3218_v59 = vpop.eup %3217 }
 0xe96   : > { %1806 = vrot.lane.b32.xlu0 %v3218_v59, %s3382_s13 }
 0xe97   : > { %v3220_v61 = vpop.eup %3219 }
 0xe98   : > { %1808 = vrot.lane.b32.xlu1 %v3220_v61, %s3382_s13  ;;  %v3222_v37 = vpop.eup %3221 }
 0xe99   : > { %v3224_v41 = vpop.eup %3223 }
 0xe9a   : > { %v3226_v42 = vpop.eup %3225  ;;  %v1794_v43 = vadd.f32 1.0, %v3224_v41 }
 0xe9b   : > { %v1795_v20 = vadd.f32 1.0, %v3226_v42  ;;  %v3228_v44 = vpop.eup %3227 }
 0xe9c   : > { %1688 = vrot.lane.b32.xlu1 %v3222_v37, %s3382_s13  ;;  %3229 = vrcp.f32 %v1794_v43  ;;  %v1682_v45 = vadd.f32 1.0, %v3228_v44  ;;  %v4015_v37 = vld [vmem:[%s4161_s5] ss:$0 sm:$0xff] }
 0xe9d   : > { %3231 = vrcp.f32 %v1795_v20 }
 0xe9e   : > { %3233 = vrcp.f32 %v1682_v45 }
 0xea9   : > { %v3230_v46 = vpop.eup %3229 }
 0xeaa   : > { %v3232_v60 = vpop.eup %3231  ;;  %v1802_v4 = vmul.f32 %v3230_v46, %v3843_v15 }
 0xeab   : > { %v3234_v1 = vpop.eup %3233  ;;  %v1803_v10 = vmul.f32 %v3232_v60, %v3847_v0 }
 0xeac   : > { %v1686_v2 = vmul.f32 %v3234_v1, %v3851_v21 }
 0xf08   : > { %v1807_v49 = vpop.permute.xlu0 %1806 }
 0xf09   : > { %v1812_v55 = vmul.f32 %v3230_v46, %v1807_v49 }
 0xf0a   : > { %v1809_v62 = vpop.permute.xlu1 %1808 }
 0xf0b   : > { %1816 = vrot.lane.b32.xlu1 %v1812_v55, %s3381_s23  ;;  %v1813_v63 = vmul.f32 %v3232_v60, %v1809_v62 }
 0xf0d   : > { %1818 = vrot.lane.b32.xlu0 %v1813_v63, %s3381_s23 }
 0xf0e   : > { %v1689_v47 = vpop.permute.xlu1 %1688 }
 0xf0f   : > { %v1691_v3 = vmul.f32 %v3234_v1, %v1689_v47 }
 0xf11   : > { %1693 = vrot.lane.b32.xlu0 %v1691_v3, %s3381_s23 }
 0xf7d   : > { %v1817_v48 = vpop.permute.xlu1 %1816 }
 0xf7e   : > { %v3922_v58 = vadd.f32 %v1817_v48, %v1802_v4 }
 0xf7f   : > { %v1819_v16 = vpop.permute.xlu0 %1818 }
 0xf80   : > { %3235 = vtanh.f32 %v3922_v58  ;;  %v3926_v50 = vadd.f32 %v1819_v16, %v1803_v10 }
 0xf82   : > { %3237 = vtanh.f32 %v3926_v50 }
 0xf83   : > { %v1694_v19 = vpop.permute.xlu0 %1693 }
 0xf84   : > { %v3930_v8 = vadd.f32 %v1694_v19, %v1686_v2 }
 0xf86   : > { %3239 = vtanh.f32 %v3930_v8 }
 0xf8d   : > { %v3236_v15 = vpop.eup %3235 }
 0xf8e   : > { %1828 = vrot.lane.b32.xlu0 %v3236_v15, %s3382_s13 }
 0xf8f   : > { %v3238_v22 = vpop.eup %3237 }
 0xf90   : > { %1830 = vrot.lane.b32.xlu1 %v3238_v22, %s3382_s13 }
 0xf93   : > { %v3240_v0 = vpop.eup %3239 }
 0xf94   : > { %1699 = vrot.lane.b32.xlu1 %v3240_v0, %s3382_s13 }
0x1000   : > { %v1829_v11 = vpop.permute.xlu0 %1828 }
0x1001   : > { %v1834_v6 = vmul.f32 %v3230_v46, %v1829_v11 }
0x1002   : > { %v1831_v23 = vpop.permute.xlu1 %1830 }
0x1003   : > { %v1835_v24 = vmul.f32 %v3232_v60, %v1831_v23 }
0x1005   : > { %v1838_v26 = vrot.slane %v1835_v24, 7 }
0x1006   : > { %v1700_v21 = vpop.permute.xlu1 %1699 }
0x1007   : > { %v3936_v27 = vmul.f32 %v3234_v1, %v1700_v21  ;;  %v1839_v17 = vsel %vm627_vm3, %v1838_v26, %v1834_v6 }
0x1008   : > { %1840 = vrot.lane.b32.xlu0 %v1839_v17, %s3381_s23 }
0x1009   : > { %1843 = vrot.lane.b32.xlu1 %v3936_v27, %s3382_s13 }
0x107a   : > { %v1841_v29 = vpop.permute.xlu0 %1840 }
0x107b   : > { %2988 = vmatmul.mubr.msk.f32.vlgmr.msra.gmra.mxu0 %vm370_vm1, %v1841_v29  ;;  %v1844_v7 = vpop.permute.xlu1 %1843 }
0x107c   : > { %v1846_v9 = vsel %vm370_vm1, %v1841_v29, %v1844_v7  ;;  %2991 = vmatpush3.msra.mxu0 %v3947_v12  ;;  %3006 = vmatprep.mubr.msk.f32.mxu0 %vm3380_vm2, %v3379_v5 }
0x107d   : > { %2977 = vmatmul.mubr.msk.f32.vlgmr.msra.gmra.mxu1 %vm637_vm4, %v1846_v9  ;;  %2992 = vmatprep.subr.mxu0 %v3379_v5 }
0x107e   : > { %2993 = vmatpush3.msra.mxu0 %v3957_v54  ;;  %3010 = vmatpush3.msra.mxu1 %v3874_v14  ;;  %v3975_v14 = vld [vmem:[%s4160_s4 + $0x20] sm:$0xff] }
0x107f   : > { %2994 = vmatprep.subr.mxu0 %v3379_v5  ;;  %3011 = vmatprep.subr.mxu1 %v3379_v5 }
0x1080   : > { %2995 = vmatpush3.msra.mxu0 %v3966_v56  ;;  %3012 = vmatpush3.msra.mxu1 %v3883_v51  ;;  %v3984_v51 = vld [vmem:[%s4160_s4 + $0x18] sm:$0xff] }
0x1081   : > { %2996 = vmatprep.subr.mxu0 %v3379_v5  ;;  %3013 = vmatprep.subr.mxu1 %v3379_v5 }
0x1082   : > { %2997 = vmatpush3.msra.mxu0 %v3975_v14  ;;  %3014 = vmatpush3.msra.mxu1 %v3892_v52  ;;  %v3994_v52 = vld [vmem:[%s4160_s4 + $0x10] sm:$0xff] }
0x1083   : > { %2998 = vmatprep.subr.mxu0 %v3379_v5  ;;  %3015 = vmatprep.subr.mxu1 %v3379_v5 }
0x1084   : > { %2999 = vmatpush3.msra.mxu0 %v3984_v51  ;;  %3016 = vmatpush3.msra.mxu1 %v3901_v53  ;;  %v4002_v53 = vld [vmem:[%s4160_s4 + $0x8] sm:$0xff] }
0x1085   : > { %3000 = vmatprep.subr.mxu0 %v3379_v5  ;;  %3017 = vmatprep.mubr.msk.f32.mxu1 %vm3380_vm2, %v3379_v5 }
0x1086   : > { %3001 = vmatpush3.msra.mxu0 %v3994_v52  ;;  %3020 = vmatprep.subr.mxu1 %v3379_v5 }
0x1087   : > { %3002 = vmatprep.subr.mxu0 %v3379_v5 }
0x1088   : > { %3003 = vmatpush3.msra.mxu0 %v4002_v53 }
0x1089   : > { %3004 = vmatprep.subr.mxu0 %v3379_v5 }
0x108a   : > { %3005 = vmatpush3.msra.mxu0 %v4009_v30 }
0x113b   : > { %v2019_v32 = vpop.f32.mrf.mxu0 }
0x113c   : > { %v2024_v33 = vrot.slane %v2019_v32, 1  ;;  %v2027_v34 = vadd.f32 %v2019_v32, %v1949_v31 }
0x113d   : > { %v1916_v35 = vpop.f32.mrf.mxu1  ;;  %v2989_v36 = vpop.f32.mrf.mxu0 }
0x113e   : > { %v2028_v59 = vadd.f32 %v2024_v33, %v1950_v57  ;;  %3241 = vtanh.f32 %v2027_v34  ;;  %v1917_v38 = vadd.f32 %v4015_v37, %v1916_v35  ;;  %v2649_v42 = vmul.f32 -1.442695, %v2027_v34  ;;  %v2191_v35 = vld [vmem:[#allocation2 + $0xf] sm:$0x1] }
0x113f   : > { %v2978_v61 = vpop.f32.mrf.mxu1 }
0x1140   : > { %3243 = vtanh.f32 %v2028_v59  ;;  %v2650_v43 = vmul.f32 -1.442695, %v2028_v59  ;;  %v2647_v20 = vmul.f32 -1.442695, %v1917_v38 }
0x1141   : > { %3245 = vtanh.f32 %v1917_v38 }
0x1142   : > { %3247 = vpow2.f32 %v2649_v42 }
0x1143   : > { %3249 = vpow2.f32 %v2650_v43 }
0x1144   : > { %3251 = vpow2.f32 %v2647_v20 }
0x114b   : > { %v3242_v39 = vpop.eup %3241 }
0x114c   : > { %2047 = vrot.lane.b32.xlu1 %v3242_v39, %s3382_s13 }
0x114d   : > { %v3244_v40 = vpop.eup %3243 }
0x114e   : > { %2049 = vrot.lane.b32.xlu0 %v3244_v40, %s3382_s13  ;;  %v3246_v41 = vpop.eup %3245 }
0x114f   : > { %v3248_v44 = vpop.eup %3247 }
0x1150   : > { %v3250_v45 = vpop.eup %3249  ;;  %v2035_v46 = vadd.f32 1.0, %v3248_v44 }
0x1151   : > { %v2036_v49 = vadd.f32 1.0, %v3250_v45  ;;  %v3252_v55 = vpop.eup %3251 }
0x1152   : > { %1929 = vrot.lane.b32.xlu0 %v3246_v41, %s3382_s13  ;;  %3253 = vrcp.f32 %v2035_v46  ;;  %v1923_v60 = vadd.f32 1.0, %v3252_v55 }
0x1153   : > { %3255 = vrcp.f32 %v2036_v49 }
0x1154   : > { %3257 = vrcp.f32 %v1923_v60 }
0x115f   : > { %v3254_v62 = vpop.eup %3253 }
0x1160   : > { %v3256_v47 = vpop.eup %3255  ;;  %v2043_v2 = vmul.f32 %v3254_v62, %v3922_v58 }
0x1161   : > { %v3258_v48 = vpop.eup %3257  ;;  %v2044_v22 = vmul.f32 %v3256_v47, %v3926_v50 }
0x1162   : > { %v1927_v23 = vmul.f32 %v3258_v48, %v3930_v8 }
0x11be   : > { %v2048_v63 = vpop.permute.xlu1 %2047 }
0x11bf   : > { %v2053_v1 = vmul.f32 %v3254_v62, %v2048_v63 }
0x11c0   : > { %v2050_v3 = vpop.permute.xlu0 %2049 }
0x11c1   : > { %2057 = vrot.lane.b32.xlu0 %v2053_v1, %s3381_s23  ;;  %v2054_v4 = vmul.f32 %v3256_v47, %v2050_v3 }
0x11c3   : > { %2059 = vrot.lane.b32.xlu1 %v2054_v4, %s3381_s23 }
0x11c4   : > { %v1930_v10 = vpop.permute.xlu0 %1929 }
0x11c5   : > { %v1932_v16 = vmul.f32 %v3258_v48, %v1930_v10 }
0x11c7   : > { %1934 = vrot.lane.b32.xlu1 %v1932_v16, %s3381_s23 }
0x1233   : > { %v2058_v19 = vpop.permute.xlu0 %2057 }
0x1234   : > { %v4025_v15 = vadd.f32 %v2058_v19, %v2043_v2 }
0x1235   : > { %v2060_v0 = vpop.permute.xlu1 %2059 }
0x1236   : > { %3259 = vtanh.f32 %v4025_v15  ;;  %v4029_v11 = vadd.f32 %v2060_v0, %v2044_v22 }
0x1238   : > { %3261 = vtanh.f32 %v4029_v11 }
0x1239   : > { %v1935_v24 = vpop.permute.xlu1 %1934 }
0x123a   : > { %v4033_v6 = vadd.f32 %v1935_v24, %v1927_v23 }
0x123c   : > { %3263 = vtanh.f32 %v4033_v6 }
0x1243   : > { %v3260_v58 = vpop.eup %3259 }
0x1244   : > { %2069 = vrot.lane.b32.xlu1 %v3260_v58, %s3382_s13 }
0x1245   : > { %v3262_v26 = vpop.eup %3261 }
0x1246   : > { %2071 = vrot.lane.b32.xlu0 %v3262_v26, %s3382_s13 }
0x1249   : > { %v3264_v50 = vpop.eup %3263 }
0x124a   : > { %1940 = vrot.lane.b32.xlu0 %v3264_v50, %s3382_s13 }
0x12b6   : > { %v2070_v21 = vpop.permute.xlu1 %2069 }
0x12b7   : > { %v2075_v7 = vmul.f32 %v3254_v62, %v2070_v21 }
0x12b8   : > { %v2072_v17 = vpop.permute.xlu0 %2071 }
0x12b9   : > { %v2076_v29 = vmul.f32 %v3256_v47, %v2072_v17 }
0x12bb   : > { %v2079_v9 = vrot.slane %v2076_v29, 7 }
0x12bc   : > { %v1941_v8 = vpop.permute.xlu0 %1940 }
0x12bd   : > { %v4039_v31 = vmul.f32 %v3258_v48, %v1941_v8  ;;  %v2080_v32 = vsel %vm627_vm3, %v2079_v9, %v2075_v7 }
0x12be   : > { %2081 = vrot.lane.b32.xlu1 %v2080_v32, %s3381_s23 }
0x12bf   : > { %2084 = vrot.lane.b32.xlu0 %v4039_v31, %s3382_s13 }
0x1330   : > { %v2082_v33 = vpop.permute.xlu1 %2081 }
0x1331   : > { %3018 = vmatmul.mubr.msk.f32.vlgmr.msra.gmra.mxu1 %vm370_vm1, %v2082_v33  ;;  %v2085_v34 = vpop.permute.xlu0 %2084 }
0x1332   : > { %v2087_v57 = vsel %vm370_vm1, %v2082_v33, %v2085_v34  ;;  %3021 = vmatpush3.msra.mxu1 %v3947_v12  ;;  %3036 = vmatprep.mubr.msk.f32.mxu1 %vm3380_vm2, %v3379_v5  ;;  %v2190_v12 = vld [vmem:[#allocation2 + $0x7] sm:$0x1] }
0x1333   : > { %3007 = vmatmul.mubr.msk.f32.vlgmr.msra.gmra.mxu0 %vm637_vm4, %v2087_v57  ;;  %3022 = vmatprep.subr.mxu1 %v3379_v5 }
0x1334   : > { %3023 = vmatpush3.msra.mxu1 %v3957_v54 }
0x1335   : > { %3024 = vmatprep.subr.mxu1 %v3379_v5 }
0x1336   : > { %3025 = vmatpush3.msra.mxu1 %v3966_v56 }
0x1337   : > { %3026 = vmatprep.subr.mxu1 %v3379_v5 }
0x1338   : > { %3027 = vmatpush3.msra.mxu1 %v3975_v14 }
0x1339   : > { %3028 = vmatprep.subr.mxu1 %v3379_v5 }
0x133a   : > { %3029 = vmatpush3.msra.mxu1 %v3984_v51 }
0x133b   : > { %3030 = vmatprep.subr.mxu1 %v3379_v5 }
0x133c   : > { %3031 = vmatpush3.msra.mxu1 %v3994_v52 }
0x133d   : > { %3032 = vmatprep.subr.mxu1 %v3379_v5 }
0x133e   : > { %3033 = vmatpush3.msra.mxu1 %v4002_v53 }
0x133f   : > { %3034 = vmatprep.subr.mxu1 %v3379_v5 }
0x1340   : > { %3035 = vmatpush3.msra.mxu1 %v4009_v30 }
0x13f1   : > { %v2260_v54 = vpop.f32.mrf.mxu1 }
0x13f2   : > { %v2265_v56 = vrot.slane %v2260_v54, 1  ;;  %v2268_v14 = vadd.f32 %v2260_v54, %v2190_v12 }
0x13f3   : > { %v2157_v36 = vpop.f32.mrf.mxu0  ;;  %v3019_v59 = vpop.f32.mrf.mxu1 }
0x13f4   : > { %v2269_v51 = vadd.f32 %v2265_v56, %v2191_v35  ;;  %3265 = vtanh.f32 %v2268_v14  ;;  %v2158_v52 = vadd.f32 %v4015_v37, %v2157_v36  ;;  %v2654_v30 = vmul.f32 -1.442695, %v2268_v14 }
0x13f5   : > { %v3008_v61 = vpop.f32.mrf.mxu0 }
0x13f6   : > { %3267 = vtanh.f32 %v2269_v51  ;;  %v2655_v39 = vmul.f32 -1.442695, %v2269_v51  ;;  %v2652_v40 = vmul.f32 -1.442695, %v2158_v52 }
0x13f7   : > { %3269 = vtanh.f32 %v2158_v52 }
0x13f8   : > { %3271 = vpow2.f32 %v2654_v30 }
0x13f9   : > { %3273 = vpow2.f32 %v2655_v39 }
0x13fa   : > { %3275 = vpow2.f32 %v2652_v40 }
0x1401   : > { %v3266_v38 = vpop.eup %3265 }
0x1402   : > { %2288 = vrot.lane.b32.xlu0 %v3266_v38, %s3382_s13 }
0x1403   : > { %v3268_v5 = vpop.eup %3267 }
0x1404   : > { %2290 = vrot.lane.b32.xlu1 %v3268_v5, %s3382_s13  ;;  %v3270_v53 = vpop.eup %3269 }
0x1405   : > { %v3272_v41 = vpop.eup %3271 }
0x1406   : > { %v3274_v42 = vpop.eup %3273  ;;  %v2276_v43 = vadd.f32 1.0, %v3272_v41  ;;  %v486_v41 = vld [vmem:[#allocation7] sm:$0x3] }
0x1407   : > { %v2277_v20 = vadd.f32 1.0, %v3274_v42  ;;  %v3276_v44 = vpop.eup %3275 }
0x1408   : > { %2170 = vrot.lane.b32.xlu1 %v3270_v53, %s3382_s13  ;;  %3277 = vrcp.f32 %v2276_v43  ;;  %v2164_v45 = vadd.f32 1.0, %v3276_v44 }
0x1409   : > { %3279 = vrcp.f32 %v2277_v20 }
0x140a   : > { %3281 = vrcp.f32 %v2164_v45 }
0x1415   : > { %v3278_v46 = vpop.eup %3277 }
0x1416   : > { %v3280_v60 = vpop.eup %3279  ;;  %v2284_v4 = vmul.f32 %v3278_v46, %v4025_v15 }
0x1417   : > { %v3282_v1 = vpop.eup %3281  ;;  %v2285_v16 = vmul.f32 %v3280_v60, %v4029_v11 }
0x1418   : > { %v2168_v0 = vmul.f32 %v3282_v1, %v4033_v6 }
0x1474   : > { %v2289_v49 = vpop.permute.xlu0 %2288 }
0x1475   : > { %v2294_v55 = vmul.f32 %v3278_v46, %v2289_v49 }
0x1476   : > { %v2291_v62 = vpop.permute.xlu1 %2290 }
0x1477   : > { %2298 = vrot.lane.b32.xlu1 %v2294_v55, %s3381_s23  ;;  %v2295_v63 = vmul.f32 %v3280_v60, %v2291_v62 }
0x1479   : > { %2300 = vrot.lane.b32.xlu0 %v2295_v63, %s3381_s23 }
0x147a   : > { %v2171_v47 = vpop.permute.xlu1 %2170 }
0x147b   : > { %v2173_v3 = vmul.f32 %v3282_v1, %v2171_v47 }
0x147d   : > { %2175 = vrot.lane.b32.xlu0 %v2173_v3, %s3381_s23 }
0x14e9   : > { %v2299_v48 = vpop.permute.xlu1 %2298 }
0x14ea   : > { %v2304_v10 = vadd.f32 %v2299_v48, %v2284_v4 }
0x14eb   : > { %v2301_v2 = vpop.permute.xlu0 %2300 }
0x14ec   : > { %3283 = vtanh.f32 %v2304_v10  ;;  %v2305_v19 = vadd.f32 %v2301_v2, %v2285_v16 }
0x14ee   : > { %3285 = vtanh.f32 %v2305_v19  ;;  %v2435_v22 = vrot.slane %v2305_v19, 7 }
0x14ef   : > { %v2176_v23 = vpop.permute.xlu0 %2175 }
0x14f0   : > { %v2178_v24 = vadd.f32 %v2176_v23, %v2168_v0  ;;  %v2436_v58 = vsel %vm627_vm3, %v2435_v22, %v2304_v10 }
0x14f2   : > { %3287 = vtanh.f32 %v2178_v24 }
0x14f9   : > { %v3284_v26 = vpop.eup %3283 }
0x14fa   : > { %2310 = vrot.lane.b32.xlu0 %v3284_v26, %s3382_s13 }
0x14fb   : > { %v3286_v15 = vpop.eup %3285 }
0x14fc   : > { %2312 = vrot.lane.b32.xlu1 %v3286_v15, %s3382_s13 }
0x14ff   : > { %v3288_v50 = vpop.eup %3287 }
0x1500   : > { %2181 = vrot.lane.b32.xlu1 %v3288_v50, %s3382_s13 }
0x156c   : > { %v2311_v11 = vpop.permute.xlu0 %2310 }
0x156d   : > { %v2316_v29 = vmul.f32 %v3278_v46, %v2311_v11 }
0x156e   : > { %v2313_v21 = vpop.permute.xlu1 %2312 }
0x156f   : > { %v2317_v17 = vmul.f32 %v3280_v60, %v2313_v21 }
0x1571   : > { %v2320_v7 = vrot.slane %v2317_v17, 7 }
0x1572   : > { %v2182_v6 = vpop.permute.xlu1 %2181 }
0x1573   : > { %v2184_v9 = vmul.f32 %v3282_v1, %v2182_v6  ;;  %v2321_v8 = vsel %vm627_vm3, %v2320_v7, %v2316_v29 }
0x1574   : > { %2322 = vrot.lane.b32.xlu0 %v2321_v8, %s3381_s23 }
0x1575   : > { %2325 = vrot.lane.b32.xlu1 %v2184_v9, %s3382_s13 }
0x15e6   : > { %v2323_v32 = vpop.permute.xlu0 %2322 }
0x15e7   : > { %2432 = vst.msk [vmem:[#allocation3] sm:$0x3] %vm2431_vm5, %v2323_v32  ;;  %v2326_v33 = vpop.permute.xlu1 %2325 }
0x15e8   : > { %v2328_v34 = vsel %vm370_vm1, %v2323_v32, %v2326_v33 }
0x15e9   : > { %3037 = vmatmul.mubr.msk.f32.vlgmr.msra.gmra.mxu1 %vm637_vm4, %v2328_v34 }
0x16a9   : > { %v2398_v57 = vpop.f32.mrf.mxu1 }
0x16aa   : > { %v2399_v12 = vadd.f32 %v4015_v37, %v2398_v57 }
0x16ab   : > { %v3038_v54 = vpop.f32.mrf.mxu1 }
0x16ac   : > { %3289 = vtanh.f32 %v2399_v12  ;;  %v2657_v14 = vmul.f32 -1.442695, %v2399_v12 }
0x16ae   : > { %3291 = vpow2.f32 %v2657_v14 }
0x16b9   : > { %v3290_v56 = vpop.eup %3289 }
0x16ba   : > { %2411 = vrot.lane.b32.xlu0 %v3290_v56, %s3382_s13 }
0x16bb   : > { %v3292_v35 = vpop.eup %3291 }
0x16bc   : > { %v2405_v36 = vadd.f32 1.0, %v3292_v35 }
0x16be   : > { %3293 = vrcp.f32 %v2405_v36 }
0x16cb   : > { %v3294_v59 = vpop.eup %3293 }
0x16cc   : > { %v2409_v37 = vmul.f32 %v3294_v59, %v2178_v24 }
0x172c   : > { %v2412_v51 = vpop.permute.xlu0 %2411 }
0x172d   : > { %v2414_v61 = vmul.f32 %v3294_v59, %v2412_v51 }
0x172f   : > { %2416 = vrot.lane.b32.xlu1 %v2414_v61, %s3381_s23 }
0x1733   : > { %740 = vrot.lane.b32.xlu1 %v3682_v13, %s3381_s23 }
0x1737   : > { %1222 = vrot.lane.b32.xlu1 %v3798_v25, %s3381_s23 }
0x173b   : > { %1704 = vrot.lane.b32.xlu1 %v3936_v27, %s3381_s23 }
0x173f   : > { %2186 = vrot.lane.b32.xlu1 %v2184_v9, %s3381_s23 }
0x1743   : > { %2437 = vrot.lane.b32.xlu1 %v2436_v58, %s3383_s20 }
0x17a1   : > { %v2417_v52 = vpop.permute.xlu1 %2416 }
0x17a2   : > { %v2419_v38 = vadd.f32 %v2417_v52, %v2409_v37 }
0x17a4   : > { %3295 = vtanh.f32 %v2419_v38 }
0x17a5   : > { %v741_v5 = vpop.permute.xlu1 %740 }
0x17a6   : > { %v743_v43 = vadd.f32 %v741_v5, %v486_v41 }
0x17a9   : > { %v1223_v53 = vpop.permute.xlu1 %1222 }
0x17ad   : > { %v1705_v30 = vpop.permute.xlu1 %1704 }
0x17b1   : > { %v3296_v39 = vpop.eup %3295  ;;  %v2187_v40 = vpop.permute.xlu1 %2186 }
0x17b2   : > { %2422 = vrot.lane.b32.xlu0 %v3296_v39, %s3382_s13 }
0x17b5   : > { %v2438_v13 = vpop.permute.xlu1 %2437 }
0x17b6   : > { %2440 = vst.msk [vmem:[#allocation4] sm:$0x3] %vm2431_vm5, %v2438_v13  ;;  %981 = vrot.lane.b32.xlu0 %v3739_v18, %s3381_s23 }
0x17ba   : > { %1463 = vrot.lane.b32.xlu0 %v3857_v28, %s3381_s23 }
0x17be   : > { %1945 = vrot.lane.b32.xlu0 %v4039_v31, %s3381_s23 }
0x1824   : > { %v2423_v25 = vpop.permute.xlu0 %2422 }
0x1825   : > { %v2425_v27 = vmul.f32 %v3294_v59, %v2423_v25 }
0x1827   : > { %2427 = vrot.lane.b32.xlu0 %v2425_v27, %s3381_s23 }
0x1828   : > { %v982_v42 = vpop.permute.xlu0 %981 }
0x1829   : > { %v984_v20 = vadd.f32 %v982_v42, %v743_v43 }
0x182b   : > { %2443 = vrot.lane.b32.xlu0 %v2419_v38, %s3383_s20  ;;  %v1225_v44 = vadd.f32 %v1223_v53, %v984_v20 }
0x182c   : > { %v1464_v45 = vpop.permute.xlu0 %1463 }
0x182d   : > { %v1466_v46 = vadd.f32 %v1464_v45, %v1225_v44 }
0x182f   : > { %v1707_v49 = vadd.f32 %v1705_v30, %v1466_v46 }
0x1830   : > { %v1946_v18 = vpop.permute.xlu0 %1945 }
0x1831   : > { %v1948_v55 = vadd.f32 %v1946_v18, %v1707_v49 }
0x1833   : > { %v2189_v60 = vadd.f32 %v2187_v40, %v1948_v55 }
0x1899   : > { %v2428_v28 = vpop.permute.xlu0 %2427 }
0x189a   : > { %v2430_v62 = vadd.f32 %v2428_v28, %v2189_v60  ;;  %2441 = vst.msk [vmem:[#allocation5] sm:$0x3] %vm2431_vm5, %v2428_v28  ;;  %2451 = sbr.rel (%p2658_p10) target bundleno = 6508 (0x196c), region = 98 }
0x189c   : > { %2447 = vst.msk [vmem:[#allocation7] sm:$0x3] %vm2431_vm5, %v2430_v62 }
0x189d   : > { %v2444_v31 = vpop.permute.xlu0 %2443 }
0x189e   : > { %2446 = vst.msk [vmem:[#allocation6] sm:$0x3] %vm2431_vm5, %v2444_v31 }
0x189f   : > { %v2456_v63 = vld [vmem:[%s4162_s6 + $0x18] sm:$0xff]  ;;  %v3384_v1 = vmov 0.0   ;;  %v2455_v47 = vld [vmem:[%s4162_s6 + $0x10] sm:$0xff]  ;;  %vm3385_vm6 = vmmov 0   ;;  %v2454_v3 = vld [vmem:[%s4162_s6 + $0x8] sm:$0xff]  ;;  %v2452_v48 = vmul.f32 0.0625, %v2430_v62 }
0x18a0   : > { %3039 = vmatprep.subr.mxu0 %v3384_v1  ;;  %3047 = vmatprep.mubr.msk.f32.mxu0 %vm3385_vm6, %v3384_v1  ;;  %v2453_v4 = vld [vmem:[%s4162_s6] sm:$0xff]  ;;  %vm2537_vm7 = vcmask 123904  }
0x18a1   : > { %3040 = vmatpush3.msra.mxu0 %v2456_v63  ;;  %v2659_v10 = vld [vmem:[%s4163_s7] ss:$0 sm:$0xff] }
0x18a2   : > { %3041 = vmatprep.subr.mxu0 %v3384_v1 }
0x18a3   : > { %3042 = vmatpush3.msra.mxu0 %v2455_v47 }
0x18a4   : > { %3043 = vmatprep.subr.mxu0 %v3384_v1 }
0x18a5   : > { %3044 = vmatpush3.msra.mxu0 %v2454_v3 }
0x18a6   : > { %3045 = vmatprep.subr.mxu0 %v3384_v1 }
0x18a7   : > { %3046 = vmatpush3.msra.mxu0 %v2453_v4 }
0x18a8   : > { %3048 = vmatmul.mubr.msk.f32.vlgmr.msra.gmra.mxu0 %vm370_vm1, %v2452_v48 }
0x1968   : > { %v2533_v16 = vpop.f32.mrf.mxu0 }
0x1969   : > { %v2534_v2 = vadd.f32 %v2659_v10, %v2533_v16 }
0x196a   : > { %v3049_v19 = vpop.f32.mrf.mxu0 }
0x196b   : > { %2538 = vst.msk [vmem:[#allocation9] sm:$0x3] %vm2537_vm7, %v2534_v2 }
0x196c PF: > { %p4126_p11 = scmp.eq.s32.totalorder %s2606_s10, 1  ;;  %s3386_s16 = smov [#allocation9]  }
0x196d   : > { %s2548_s17 = sshll.u32 %s3386_s16, 4  ;;  %s2549_s17 = int_to_ptr.vmem [resolvable:$true] %s2548_s17 }
0x196e   : > { %s3310_s18 = scalar_lea.vmem %s2549_s17, 32  ;;  %p3317_p1 = scmp.lt.s32.totalorder %s2549_s17, %s2549_s17 }
0x196f   : > { %p3311_p12 = scmp.ne.s32.totalorder %s2549_s17, %s3310_s18  ;;  %p3318_p2 = scmp.lt.s32.totalorder %s3310_s18, %s3310_s18 }
0x1971   : > { %p3312_p13 = pnand %p3311_p12, %p4126_p11  ;;  %p3319_p3 = por %p3318_p2, %p3317_p1 }
0x1973   : > { %p3313_p0 = pneg %p3312_p13 }
0x1975   : > { %p3320_p4 = pnand %p3319_p3, %p3313_p0 }
0x1977   : > { %3323 = shalt.err (!%p3320_p4)
}
0x1978   : > { %3051 = dma.vmem_to_hbm [thread:$0]  (%p4126_p11), %s2549_s17, 32, %s4164_s8, [#allocation10]  }
0x1979   : > { %3355 = dma.done.wait (%p4126_p11), [#allocation10], 32  }
0x197a   : > { %3357 = vsyncadd (%p4126_p11), [#allocation10], 4294967264 }
0x197b PF: > { %s19_s9 = sadd.s32 1, %s3376_s9   ;;  %s4166_s27 = smov %s3364_s28 }
0x197c   : > { %p16_p5 = scmp.ge.s32.totalorder %s19_s9, 4   ;;  %s4167_s28 = smov %s3468_s14 }
0x197d   : > { %s4168_s29 = smov %s3372_s30  ;;  %s4169_s30 = smov %s4171_s11 }
0x197e   :  { %18 = sbr.rel (!%p16_p5) target bundleno = 3 (0x3), region = 131 }
0x1983   :  { %2561 = vsyncpa [#allocation10], 1 }
0x1984   :  { %2563 = vsyncpa [#allocation10 + $0x1], 1 }

</bundles_post_ra>
